<compile_context>
chip_gen: v7x
topology: tpu7x:2x2x1
jax: 0.10.0
libtpu: 0.0.40
codegen_flags: <defaults>
</compile_context>

<pallas_src>
import functools

import jax
import jax.numpy as jnp
from jax.experimental import pallas as pl
from jax.experimental.pallas import tpu as pltpu


# ----------------------------- Fused Pallas kernel ---------------------------

def _label_rnn_kernel(labels_ref, packidx_ref,            # SMEM (scalar prefetch)
                      embed_ref, feat_ref, *refs,         # VMEM inputs / output / scratch
                      T, B, Bp, H, num_layers, t_labels, n_packed):
    """Embedding gather + stacked LSTM (T steps) + packed gather + linear, fully fused.

    VMEM inputs (after the two SMEM prefetch refs):
      embed_ref : (label_num, E)      feat_ref : (B, E)
      per layer : w_ih_t (in, 4H), w_hh_t (H, 4H), bias (1, 4H)  [g-gate cols pre-scaled x2]
      w_out_t   : (H, Lp)             b_out    : (1, Lp)
    Output:
      out_ref   : (Np, Lp)  -- rows in packed (time-major, sorted-batch) order
    Scratch:
      x_scr (T*Bp, E), gin_scr (T*Bp, 4H), h_scr (T*Bp, H), pk_scr (Np, H)
    """
    layer_refs = refs[:3 * num_layers]
    wout_ref, bout_ref, out_ref = refs[3 * num_layers:3 * num_layers + 3]
    x_scr, gin_scr, h_scr, pk_scr = refs[3 * num_layers + 3:]

    # --- Assemble the layer-0 input, time-major rows (t*Bp + b), in VMEM scratch. ---
    x_scr[...] = jnp.zeros_like(x_scr)                    # deterministic padded-batch rows
    x_scr[pl.ds(0, B), :] = feat_ref[...]                 # timestep 0 = input features
    for t in range(1, T):                                 # timesteps 1..T-1 = embed(labels)
        for b in range(B):
            lab = labels_ref[b * t_labels + (t - 1)]      # SMEM scalar
            x_scr[pl.ds(t * Bp + b, 1), :] = embed_ref[pl.ds(lab, 1), :]

    # --- Stacked LSTM (PyTorch gate order i, f, g, o). ---
    in_scr = x_scr
    for li in range(num_layers):
        wih = layer_refs[3 * li][...]                     # (in, 4H), g cols pre-scaled x2
        whh = layer_refs[3 * li + 1][...]                 # (H, 4H),  g cols pre-scaled x2
        bias = layer_refs[3 * li + 2][...]                # (1, 4H),  g cols pre-scaled x2

        # Hoisted input projection for ALL timesteps -> VMEM scratch (off the serial path).
        gin_scr[...] = (jnp.dot(in_scr[...], wih, preferred_element_type=jnp.float32)
                        + bias)

        h = None
        c = None
        for t in range(T):                                # T small & static -> unrolled
            g_in = gin_scr[pl.ds(t * Bp, Bp), :]          # (Bp, 4H) slice load
            if t == 0:
                gates = g_in                              # h0 == 0: skip recurrent matmul
            else:
                gates = g_in + jnp.dot(h, whh, preferred_element_type=jnp.float32)
            # One sigmoid pass over the full 4H-lane tile; g recovered via
            # tanh(x) = 2*sigmoid(2x) - 1 (g columns were pre-scaled by 2).
            act = jax.nn.sigmoid(gates)
            i_g = act[:, 0 * H:1 * H]
            f_g = act[:, 1 * H:2 * H]
            g_g = 2.0 * act[:, 2 * H:3 * H] - 1.0
            o_g = act[:, 3 * H:4 * H]
            c = i_g * g_g if t == 0 else f_g * c + i_g * g_g
            h = o_g * jnp.tanh(c)
            h_scr[pl.ds(t * Bp, Bp), :] = h               # per-step store (free slot)
        in_scr = h_scr                                    # next layer reads the scratch

    # --- Packed-order gather + final linear (only packed rows are emitted). ---
    pk_scr[...] = jnp.zeros_like(pk_scr)
    for p in range(n_packed):
        row = packidx_ref[p]                              # SMEM scalar: t*Bp + b
        pk_scr[pl.ds(p, 1), :] = h_scr[pl.ds(row, 1), :]
    out_ref[...] = (jnp.dot(pk_scr[...], wout_ref[...], preferred_element_type=jnp.float32)
                    + bout_ref[...])


# ----------------------------- Model glue ------------------------------------

def packed_order(lengths):
    """(b, t) index pairs in torch pack_padded_sequence (batch_first, sorted) order."""
    t_max = max(lengths)
    b_idx, t_idx = [], []
    for t in range(t_max):
        for b, length in enumerate(lengths):
            if length > t:
                b_idx.append(b)
                t_idx.append(t)
    return b_idx, t_idx


def prepare_kernel_params(params, hidden_size):
    """One-time parameter prep: pre-scale g-gate columns by 2 (tanh-via-sigmoid trick) and
    lane-pad the output linear to a multiple of 128."""
    H = hidden_size
    L = params["w_out_t"].shape[1]
    Lp = ((L + 127) // 128) * 128

    def scale_g(w):
        return w.at[..., 2 * H:3 * H].multiply(2.0)

    return {
        "embed": params["embed"].astype(jnp.float32),
        "lstm": [{"w_ih_t": scale_g(l["w_ih_t"]),
                  "w_hh_t": scale_g(l["w_hh_t"]),
                  "bias": scale_g(l["bias"])} for l in params["lstm"]],
        "w_out_t": jnp.pad(params["w_out_t"], ((0, 0), (0, Lp - L))),
        "b_out": jnp.pad(params["b_out"], ((0, 0), (0, Lp - L))),
        "label_num": L,
    }


def label_rnn_forward(kparams, features, labels, lengths, hidden_size):
    B, E = features.shape
    t_labels = labels.shape[1]
    T = t_labels + 1
    H = hidden_size
    L = kparams["label_num"]
    Lp = kparams["w_out_t"].shape[1]
    num_layers = len(kparams["lstm"])

    assert max(lengths) <= T, "a sequence length exceeds t_labels + 1"
    assert list(lengths) == sorted(lengths, reverse=True), "lengths must be sorted descending"

    Bp = max(8, ((B + 7) // 8) * 8)                       # sublane-pad the batch
    n_packed = int(sum(lengths))
    Np = ((n_packed + 7) // 8) * 8

    # Static packed-order row indices into the time-major (t*Bp + b) layout -> SMEM.
    b_idx, t_idx = packed_order(lengths)
    pack_idx = jnp.array([t * Bp + b for b, t in zip(b_idx, t_idx)], jnp.int32)
    labels_flat = labels.reshape(-1).astype(jnp.int32)    # (B * t_labels,)

    args = [kparams["embed"], features.astype(jnp.float32)]
    for layer in kparams["lstm"]:
        args += [layer["w_ih_t"], layer["w_hh_t"], layer["bias"]]
    args += [kparams["w_out_t"], kparams["b_out"]]

    def full_spec(a):
        nd = a.ndim
        return pl.BlockSpec(a.shape, lambda i, lab, pidx, _nd=nd: (0,) * _nd)

    kernel = functools.partial(
        _label_rnn_kernel, T=T, B=B, Bp=Bp, H=H, num_layers=num_layers,
        t_labels=t_labels, n_packed=n_packed)

    grid_spec = pltpu.PrefetchScalarGridSpec(
        num_scalar_prefetch=2,
        grid=(1,),
        in_specs=[full_spec(a) for a in args],
        out_specs=pl.BlockSpec((Np, Lp), lambda i, lab, pidx: (0, 0)),
        scratch_shapes=[
            pltpu.VMEM((T * Bp, E), jnp.float32),         # layer-0 input (time-major)
            pltpu.VMEM((T * Bp, 4 * H), jnp.float32),     # hoisted gate projection
            pltpu.VMEM((T * Bp, H), jnp.float32),         # per-layer hidden states
            pltpu.VMEM((Np, H), jnp.float32),             # packed-order hidden rows
        ],
    )

    out_padded = pl.pallas_call(
        kernel,
        out_shape=jax.ShapeDtypeStruct((Np, Lp), jnp.float32),
        grid_spec=grid_spec,
        compiler_params=pltpu.CompilerParams(dimension_semantics=("arbitrary",)),
    )(labels_flat, pack_idx, *args)

    return out_padded[:n_packed, :L]


# -------------------------- Pure-JAX reference --------------------------------

def _lstm_layer_ref(x_tm, w_ih_t, w_hh_t, bias, H):
    T, B, _ = x_tm.shape
    h = jnp.zeros((B, H), jnp.float32)
    c = jnp.zeros((B, H), jnp.float32)
    outs = []
    for t in range(T):
        gates = x_tm[t] @ w_ih_t + h @ w_hh_t + bias
        i_g = jax.nn.sigmoid(gates[:, :H])
        f_g = jax.nn.sigmoid(gates[:, H:2 * H])
        g_g = jnp.tanh(gates[:, 2 * H:3 * H])
        o_g = jax.nn.sigmoid(gates[:, 3 * H:4 * H])
        c = f_g * c + i_g * g_g
        h = o_g * jnp.tanh(c)
        outs.append(h)
    return jnp.stack(outs, 0)


def label_rnn_forward_ref(params, features, labels, lengths, hidden_size):
    emb = jnp.take(params["embed"], labels, axis=0)
    seq = jnp.concatenate([features[:, None, :], emb], axis=1)
    x = jnp.transpose(seq, (1, 0, 2)).astype(jnp.float32)
    for layer in params["lstm"]:
        x = _lstm_layer_ref(x, layer["w_ih_t"], layer["w_hh_t"], layer["bias"],
                            hidden_size)
    h_bt = jnp.transpose(x, (1, 0, 2))
    b_idx, t_idx = packed_order(lengths)
    packed_h = h_bt[jnp.array(b_idx), jnp.array(t_idx)]
    return packed_h @ params["w_out_t"] + params["b_out"]


# ----------------------------- Main -------------------------------------------

if __name__ == "__main__":
    embed_size = 32
    hidden_size = 32
    label_num = 16
    num_layers = 2

    batch = 2
    t_labels = 4                     # labels per sequence -> seq length T = t_labels + 1
    lengths = [5, 3]                 # sorted descending (enforce_sorted=True semantics)

    key = jax.random.PRNGKey(0)
    keys = jax.random.split(key, 16)

    # Deterministic synthetic parameters (shapes follow nn.Embedding / nn.LSTM / nn.Linear).
    params = {
        "embed": 0.1 * jax.random.normal(keys[0], (label_num, embed_size), jnp.float32),
        "lstm": [],
        # nn.Linear weight is (label_num, hidden_size); store transposed for the matmul.
        "w_out_t": 0.1 * jax.random.normal(keys[1], (hidden_size, label_num), jnp.float32),
        "b_out": 0.1 * jax.random.normal(keys[2], (1, label_num), jnp.float32),
    }
    for layer_i in range(num_layers):
        in_size = embed_size if layer_i == 0 else hidden_size
        k = jax.random.split(keys[3 + layer_i], 4)
        w_ih = 0.1 * jax.random.normal(k[0], (4 * hidden_size, in_size), jnp.float32)
        w_hh = 0.1 * jax.random.normal(k[1], (4 * hidden_size, hidden_size), jnp.float32)
        b_ih = 0.1 * jax.random.normal(k[2], (4 * hidden_size,), jnp.float32)
        b_hh = 0.1 * jax.random.normal(k[3], (4 * hidden_size,), jnp.float32)
        params["lstm"].append({
            "w_ih_t": w_ih.T,                              # (in, 4H)
            "w_hh_t": w_hh.T,                              # (H, 4H)
            "bias": (b_ih + b_hh).reshape(1, 4 * hidden_size),
        })

    features = jax.random.normal(keys[10], (batch, embed_size), jnp.float32)
    labels = jax.random.randint(keys[11], (batch, t_labels), 0, label_num, jnp.int32)

    # One-time kernel-side parameter prep (g-gate pre-scale + output lane padding).
    kparams = prepare_kernel_params(params, hidden_size)

    out = label_rnn_forward(kparams, features, labels, lengths, hidden_size)
    out = jax.block_until_ready(out)

    ref = label_rnn_forward_ref(params, features, labels, lengths, hidden_size)
    assert out.shape == (sum(lengths), label_num), out.shape
    assert jnp.allclose(out, ref, rtol=2e-4, atol=2e-5), "mismatch vs pure-JAX reference"

    print("KERNEL_OK")
</pallas_src>

<mosaic_0001>
module attributes {stable_mosaic.version = 11 : i64} {
  func.func @_label_rnn_kernel(%arg0: i32, %arg1: memref<8xi32, #tpu.memory_space<smem>>, %arg2: memref<8xi32, #tpu.memory_space<smem>>, %arg3: memref<16x32xf32, #tpu.memory_space<vmem>>, %arg4: memref<2x32xf32, #tpu.memory_space<vmem>>, %arg5: memref<32x128xf32, #tpu.memory_space<vmem>>, %arg6: memref<32x128xf32, #tpu.memory_space<vmem>>, %arg7: memref<1x128xf32, #tpu.memory_space<vmem>>, %arg8: memref<32x128xf32, #tpu.memory_space<vmem>>, %arg9: memref<32x128xf32, #tpu.memory_space<vmem>>, %arg10: memref<1x128xf32, #tpu.memory_space<vmem>>, %arg11: memref<32x128xf32, #tpu.memory_space<vmem>>, %arg12: memref<1x128xf32, #tpu.memory_space<vmem>>, %arg13: memref<8x128xf32, #tpu.memory_space<vmem>>, %arg14: memref<40x32xf32, #tpu.memory_space<vmem>>, %arg15: memref<40x128xf32, #tpu.memory_space<vmem>>, %arg16: memref<40x32xf32, #tpu.memory_space<vmem>>, %arg17: memref<8x32xf32, #tpu.memory_space<vmem>>) attributes {dimension_semantics = [#tpu.dimension_semantics<arbitrary>], iteration_bounds = array<i64: 1>, scalar_prefetch = 2 : i64, scratch_operands = 4 : i64, tpu.core_type = #tpu.core_type<tc>, window_params = [{pipeline_mode = #tpu.pipeline_mode<synchronous>, transform_indices = @transform_0, window_bounds = array<i64: 16, 32>}, {pipeline_mode = #tpu.pipeline_mode<synchronous>, transform_indices = @transform_1, window_bounds = array<i64: 2, 32>}, {pipeline_mode = #tpu.pipeline_mode<synchronous>, transform_indices = @transform_2, window_bounds = array<i64: 32, 128>}, {pipeline_mode = #tpu.pipeline_mode<synchronous>, transform_indices = @transform_3, window_bounds = array<i64: 32, 128>}, {pipeline_mode = #tpu.pipeline_mode<synchronous>, transform_indices = @transform_4, window_bounds = array<i64: 1, 128>}, {pipeline_mode = #tpu.pipeline_mode<synchronous>, transform_indices = @transform_5, window_bounds = array<i64: 32, 128>}, {pipeline_mode = #tpu.pipeline_mode<synchronous>, transform_indices = @transform_6, window_bounds = array<i64: 32, 128>}, {pipeline_mode = #tpu.pipeline_mode<synchronous>, transform_indices = @transform_7, window_bounds = array<i64: 1, 128>}, {pipeline_mode = #tpu.pipeline_mode<synchronous>, transform_indices = @transform_8, window_bounds = array<i64: 32, 128>}, {pipeline_mode = #tpu.pipeline_mode<synchronous>, transform_indices = @transform_9, window_bounds = array<i64: 1, 128>}, {pipeline_mode = #tpu.pipeline_mode<synchronous>, transform_indices = @transform_10, window_bounds = array<i64: 8, 128>}]} {
    %cst = arith.constant 0.000000e+00 : f32
    %0 = vector.broadcast %cst : f32 to vector<40x32xf32>
    %c0 = arith.constant 0 : index
    %c0_0 = arith.constant 0 : index
    %1 = vector.load %arg14[%c0, %c0_0] : memref<40x32xf32, #tpu.memory_space<vmem>>, vector<40x32xf32>
    tpu.vector_store %arg14[%c0, %c0_0], %0 {strides = array<i32>} : memref<40x32xf32, #tpu.memory_space<vmem>>, vector<40x32xf32>,
    %c0_1 = arith.constant 0 : index
    %c0_2 = arith.constant 0 : index
    %2 = vector.load %arg4[%c0_1, %c0_2] : memref<2x32xf32, #tpu.memory_space<vmem>>, vector<2x32xf32>
    %c0_3 = arith.constant 0 : index
    %c0_4 = arith.constant 0 : index
    %3 = vector.load %arg14[%c0_3, %c0_4] : memref<40x32xf32, #tpu.memory_space<vmem>>, vector<2x32xf32>
    tpu.vector_store %arg14[%c0_3, %c0_4], %2 {strides = array<i32>} : memref<40x32xf32, #tpu.memory_space<vmem>>, vector<2x32xf32>,
    %c0_5 = arith.constant 0 : index
    %4 = memref.load %arg1[%c0_5] : memref<8xi32, #tpu.memory_space<smem>>
    %5 = arith.index_cast %4 : i32 to index
    %c0_6 = arith.constant 0 : index
    %6 = vector.load %arg3[%5, %c0_6] : memref<16x32xf32, #tpu.memory_space<vmem>>, vector<1x32xf32>
    %c8 = arith.constant 8 : index
    %c0_7 = arith.constant 0 : index
    %7 = vector.load %arg14[%c8, %c0_7] : memref<40x32xf32, #tpu.memory_space<vmem>>, vector<1x32xf32>
    tpu.vector_store %arg14[%c8, %c0_7], %6 {strides = array<i32>} : memref<40x32xf32, #tpu.memory_space<vmem>>, vector<1x32xf32>,
    %c4 = arith.constant 4 : index
    %8 = memref.load %arg1[%c4] : memref<8xi32, #tpu.memory_space<smem>>
    %9 = arith.index_cast %8 : i32 to index
    %c0_8 = arith.constant 0 : index
    %10 = vector.load %arg3[%9, %c0_8] : memref<16x32xf32, #tpu.memory_space<vmem>>, vector<1x32xf32>
    %c9 = arith.constant 9 : index
    %c0_9 = arith.constant 0 : index
    %11 = vector.load %arg14[%c9, %c0_9] : memref<40x32xf32, #tpu.memory_space<vmem>>, vector<1x32xf32>
    tpu.vector_store %arg14[%c9, %c0_9], %10 {strides = array<i32>} : memref<40x32xf32, #tpu.memory_space<vmem>>, vector<1x32xf32>,
    %c1 = arith.constant 1 : index
    %12 = memref.load %arg1[%c1] : memref<8xi32, #tpu.memory_space<smem>>
    %13 = arith.index_cast %12 : i32 to index
    %c0_10 = arith.constant 0 : index
    %14 = vector.load %arg3[%13, %c0_10] : memref<16x32xf32, #tpu.memory_space<vmem>>, vector<1x32xf32>
    %c16 = arith.constant 16 : index
    %c0_11 = arith.constant 0 : index
    %15 = vector.load %arg14[%c16, %c0_11] : memref<40x32xf32, #tpu.memory_space<vmem>>, vector<1x32xf32>
    tpu.vector_store %arg14[%c16, %c0_11], %14 {strides = array<i32>} : memref<40x32xf32, #tpu.memory_space<vmem>>, vector<1x32xf32>,
    %c5 = arith.constant 5 : index
    %16 = memref.load %arg1[%c5] : memref<8xi32, #tpu.memory_space<smem>>
    %17 = arith.index_cast %16 : i32 to index
    %c0_12 = arith.constant 0 : index
    %18 = vector.load %arg3[%17, %c0_12] : memref<16x32xf32, #tpu.memory_space<vmem>>, vector<1x32xf32>
    %c17 = arith.constant 17 : index
    %c0_13 = arith.constant 0 : index
    %19 = vector.load %arg14[%c17, %c0_13] : memref<40x32xf32, #tpu.memory_space<vmem>>, vector<1x32xf32>
    tpu.vector_store %arg14[%c17, %c0_13], %18 {strides = array<i32>} : memref<40x32xf32, #tpu.memory_space<vmem>>, vector<1x32xf32>,
    %c2 = arith.constant 2 : index
    %20 = memref.load %arg1[%c2] : memref<8xi32, #tpu.memory_space<smem>>
    %21 = arith.index_cast %20 : i32 to index
    %c0_14 = arith.constant 0 : index
    %22 = vector.load %arg3[%21, %c0_14] : memref<16x32xf32, #tpu.memory_space<vmem>>, vector<1x32xf32>
    %c24 = arith.constant 24 : index
    %c0_15 = arith.constant 0 : index
    %23 = vector.load %arg14[%c24, %c0_15] : memref<40x32xf32, #tpu.memory_space<vmem>>, vector<1x32xf32>
    tpu.vector_store %arg14[%c24, %c0_15], %22 {strides = array<i32>} : memref<40x32xf32, #tpu.memory_space<vmem>>, vector<1x32xf32>,
    %c6 = arith.constant 6 : index
    %24 = memref.load %arg1[%c6] : memref<8xi32, #tpu.memory_space<smem>>
    %25 = arith.index_cast %24 : i32 to index
    %c0_16 = arith.constant 0 : index
    %26 = vector.load %arg3[%25, %c0_16] : memref<16x32xf32, #tpu.memory_space<vmem>>, vector<1x32xf32>
    %c25 = arith.constant 25 : index
    %c0_17 = arith.constant 0 : index
    %27 = vector.load %arg14[%c25, %c0_17] : memref<40x32xf32, #tpu.memory_space<vmem>>, vector<1x32xf32>
    tpu.vector_store %arg14[%c25, %c0_17], %26 {strides = array<i32>} : memref<40x32xf32, #tpu.memory_space<vmem>>, vector<1x32xf32>,
    %c3 = arith.constant 3 : index
    %28 = memref.load %arg1[%c3] : memref<8xi32, #tpu.memory_space<smem>>
    %29 = arith.index_cast %28 : i32 to index
    %c0_18 = arith.constant 0 : index
    %30 = vector.load %arg3[%29, %c0_18] : memref<16x32xf32, #tpu.memory_space<vmem>>, vector<1x32xf32>
    %c32 = arith.constant 32 : index
    %c0_19 = arith.constant 0 : index
    %31 = vector.load %arg14[%c32, %c0_19] : memref<40x32xf32, #tpu.memory_space<vmem>>, vector<1x32xf32>
    tpu.vector_store %arg14[%c32, %c0_19], %30 {strides = array<i32>} : memref<40x32xf32, #tpu.memory_space<vmem>>, vector<1x32xf32>,
    %c7 = arith.constant 7 : index
    %32 = memref.load %arg1[%c7] : memref<8xi32, #tpu.memory_space<smem>>
    %33 = arith.index_cast %32 : i32 to index
    %c0_20 = arith.constant 0 : index
    %34 = vector.load %arg3[%33, %c0_20] : memref<16x32xf32, #tpu.memory_space<vmem>>, vector<1x32xf32>
    %c33 = arith.constant 33 : index
    %c0_21 = arith.constant 0 : index
    %35 = vector.load %arg14[%c33, %c0_21] : memref<40x32xf32, #tpu.memory_space<vmem>>, vector<1x32xf32>
    tpu.vector_store %arg14[%c33, %c0_21], %34 {strides = array<i32>} : memref<40x32xf32, #tpu.memory_space<vmem>>, vector<1x32xf32>,
    %c0_22 = arith.constant 0 : index
    %c0_23 = arith.constant 0 : index
    %36 = vector.load %arg5[%c0_22, %c0_23] : memref<32x128xf32, #tpu.memory_space<vmem>>, vector<32x128xf32>
    %c0_24 = arith.constant 0 : index
    %c0_25 = arith.constant 0 : index
    %37 = vector.load %arg6[%c0_24, %c0_25] : memref<32x128xf32, #tpu.memory_space<vmem>>, vector<32x128xf32>
    %c0_26 = arith.constant 0 : index
    %c0_27 = arith.constant 0 : index
    %38 = vector.load %arg7[%c0_26, %c0_27] : memref<1x128xf32, #tpu.memory_space<vmem>>, vector<1x128xf32>
    %c0_28 = arith.constant 0 : index
    %c0_29 = arith.constant 0 : index
    %39 = vector.load %arg14[%c0_28, %c0_29] : memref<40x32xf32, #tpu.memory_space<vmem>>, vector<40x32xf32>
    %cst_30 = arith.constant dense<0.000000e+00> : vector<40x128xf32>
    %40 = tpu.matmul %39, %36, %cst_30 {dimension_numbers = #tpu.dot_dimension_numbers<[1], [0], [0], [1], [0, 0, 1, 1], [], []>} : vector<40x32xf32>, vector<32x128xf32>, vector<40x128xf32> -> vector<40x128xf32>
    %41 = vector.broadcast %38 : vector<1x128xf32> to vector<40x128xf32>
    %42 = arith.addf %40, %41 : vector<40x128xf32>
    %c0_31 = arith.constant 0 : index
    %c0_32 = arith.constant 0 : index
    %43 = vector.load %arg15[%c0_31, %c0_32] : memref<40x128xf32, #tpu.memory_space<vmem>>, vector<40x128xf32>
    tpu.vector_store %arg15[%c0_31, %c0_32], %42 {strides = array<i32>} : memref<40x128xf32, #tpu.memory_space<vmem>>, vector<40x128xf32>,
    %c0_33 = arith.constant 0 : index
    %c0_34 = arith.constant 0 : index
    %44 = vector.load %arg15[%c0_33, %c0_34] : memref<40x128xf32, #tpu.memory_space<vmem>>, vector<8x128xf32>
    %45 = arith.negf %44 : vector<8x128xf32>
    %46 = math.exp %45 : vector<8x128xf32>
    %cst_35 = arith.constant 1.000000e+00 : f32
    %47 = vector.broadcast %cst_35 : f32 to vector<8x128xf32>
    %48 = arith.addf %47, %46 : vector<8x128xf32>
    %49 = arith.divf %47, %48 : vector<8x128xf32>
    %50 = vector.extract_strided_slice %49 {offsets = [0, 0], sizes = [8, 32], strides = [1, 1]} : vector<8x128xf32> to vector<8x32xf32>
    %51 = vector.extract_strided_slice %49 {offsets = [0, 64], sizes = [8, 32], strides = [1, 1]} : vector<8x128xf32> to vector<8x32xf32>
    %cst_36 = arith.constant 2.000000e+00 : f32
    %52 = vector.broadcast %cst_36 : f32 to vector<8x32xf32>
    %53 = arith.mulf %52, %51 : vector<8x32xf32>
    %cst_37 = arith.constant 1.000000e+00 : f32
    %54 = vector.broadcast %cst_37 : f32 to vector<8x32xf32>
    %55 = arith.subf %53, %54 : vector<8x32xf32>
    %56 = vector.extract_strided_slice %49 {offsets = [0, 96], sizes = [8, 32], strides = [1, 1]} : vector<8x128xf32> to vector<8x32xf32>
    %57 = arith.mulf %50, %55 : vector<8x32xf32>
    %58 = math.tanh %57 : vector<8x32xf32>
    %59 = arith.mulf %56, %58 : vector<8x32xf32>
    %c0_38 = arith.constant 0 : index
    %c0_39 = arith.constant 0 : index
    %60 = vector.load %arg16[%c0_38, %c0_39] : memref<40x32xf32, #tpu.memory_space<vmem>>, vector<8x32xf32>
    tpu.vector_store %arg16[%c0_38, %c0_39], %59 {strides = array<i32>} : memref<40x32xf32, #tpu.memory_space<vmem>>, vector<8x32xf32>,
    %c8_40 = arith.constant 8 : index
    %c0_41 = arith.constant 0 : index
    %61 = vector.load %arg15[%c8_40, %c0_41] : memref<40x128xf32, #tpu.memory_space<vmem>>, vector<8x128xf32>
    %cst_42 = arith.constant dense<0.000000e+00> : vector<8x128xf32>
    %62 = tpu.matmul %59, %37, %cst_42 {dimension_numbers = #tpu.dot_dimension_numbers<[1], [0], [0], [1], [0, 0, 1, 1], [], []>} : vector<8x32xf32>, vector<32x128xf32>, vector<8x128xf32> -> vector<8x128xf32>
    %63 = arith.addf %61, %62 : vector<8x128xf32>
    %64 = arith.negf %63 : vector<8x128xf32>
    %65 = math.exp %64 : vector<8x128xf32>
    %cst_43 = arith.constant 1.000000e+00 : f32
    %66 = vector.broadcast %cst_43 : f32 to vector<8x128xf32>
    %67 = arith.addf %66, %65 : vector<8x128xf32>
    %68 = arith.divf %66, %67 : vector<8x128xf32>
    %69 = vector.extract_strided_slice %68 {offsets = [0, 0], sizes = [8, 32], strides = [1, 1]} : vector<8x128xf32> to vector<8x32xf32>
    %70 = vector.extract_strided_slice %68 {offsets = [0, 32], sizes = [8, 32], strides = [1, 1]} : vector<8x128xf32> to vector<8x32xf32>
    %71 = vector.extract_strided_slice %68 {offsets = [0, 64], sizes = [8, 32], strides = [1, 1]} : vector<8x128xf32> to vector<8x32xf32>
    %cst_44 = arith.constant 2.000000e+00 : f32
    %72 = vector.broadcast %cst_44 : f32 to vector<8x32xf32>
    %73 = arith.mulf %72, %71 : vector<8x32xf32>
    %cst_45 = arith.constant 1.000000e+00 : f32
    %74 = vector.broadcast %cst_45 : f32 to vector<8x32xf32>
    %75 = arith.subf %73, %74 : vector<8x32xf32>
    %76 = vector.extract_strided_slice %68 {offsets = [0, 96], sizes = [8, 32], strides = [1, 1]} : vector<8x128xf32> to vector<8x32xf32>
    %77 = arith.mulf %70, %57 : vector<8x32xf32>
    %78 = arith.mulf %69, %75 : vector<8x32xf32>
    %79 = arith.addf %77, %78 : vector<8x32xf32>
    %80 = math.tanh %79 : vector<8x32xf32>
    %81 = arith.mulf %76, %80 : vector<8x32xf32>
    %c8_46 = arith.constant 8 : index
    %c0_47 = arith.constant 0 : index
    %82 = vector.load %arg16[%c8_46, %c0_47] : memref<40x32xf32, #tpu.memory_space<vmem>>, vector<8x32xf32>
    tpu.vector_store %arg16[%c8_46, %c0_47], %81 {strides = array<i32>} : memref<40x32xf32, #tpu.memory_space<vmem>>, vector<8x32xf32>,
    %c16_48 = arith.constant 16 : index
    %c0_49 = arith.constant 0 : index
    %83 = vector.load %arg15[%c16_48, %c0_49] : memref<40x128xf32, #tpu.memory_space<vmem>>, vector<8x128xf32>
    %cst_50 = arith.constant dense<0.000000e+00> : vector<8x128xf32>
    %84 = tpu.matmul %81, %37, %cst_50 {dimension_numbers = #tpu.dot_dimension_numbers<[1], [0], [0], [1], [0, 0, 1, 1], [], []>} : vector<8x32xf32>, vector<32x128xf32>, vector<8x128xf32> -> vector<8x128xf32>
    %85 = arith.addf %83, %84 : vector<8x128xf32>
    %86 = arith.negf %85 : vector<8x128xf32>
    %87 = math.exp %86 : vector<8x128xf32>
    %cst_51 = arith.constant 1.000000e+00 : f32
    %88 = vector.broadcast %cst_51 : f32 to vector<8x128xf32>
    %89 = arith.addf %88, %87 : vector<8x128xf32>
    %90 = arith.divf %88, %89 : vector<8x128xf32>
    %91 = vector.extract_strided_slice %90 {offsets = [0, 0], sizes = [8, 32], strides = [1, 1]} : vector<8x128xf32> to vector<8x32xf32>
    %92 = vector.extract_strided_slice %90 {offsets = [0, 32], sizes = [8, 32], strides = [1, 1]} : vector<8x128xf32> to vector<8x32xf32>
    %93 = vector.extract_strided_slice %90 {offsets = [0, 64], sizes = [8, 32], strides = [1, 1]} : vector<8x128xf32> to vector<8x32xf32>
    %cst_52 = arith.constant 2.000000e+00 : f32
    %94 = vector.broadcast %cst_52 : f32 to vector<8x32xf32>
    %95 = arith.mulf %94, %93 : vector<8x32xf32>
    %cst_53 = arith.constant 1.000000e+00 : f32
    %96 = vector.broadcast %cst_53 : f32 to vector<8x32xf32>
    %97 = arith.subf %95, %96 : vector<8x32xf32>
    %98 = vector.extract_strided_slice %90 {offsets = [0, 96], sizes = [8, 32], strides = [1, 1]} : vector<8x128xf32> to vector<8x32xf32>
    %99 = arith.mulf %92, %79 : vector<8x32xf32>
    %100 = arith.mulf %91, %97 : vector<8x32xf32>
    %101 = arith.addf %99, %100 : vector<8x32xf32>
    %102 = math.tanh %101 : vector<8x32xf32>
    %103 = arith.mulf %98, %102 : vector<8x32xf32>
    %c16_54 = arith.constant 16 : index
    %c0_55 = arith.constant 0 : index
    %104 = vector.load %arg16[%c16_54, %c0_55] : memref<40x32xf32, #tpu.memory_space<vmem>>, vector<8x32xf32>
    tpu.vector_store %arg16[%c16_54, %c0_55], %103 {strides = array<i32>} : memref<40x32xf32, #tpu.memory_space<vmem>>, vector<8x32xf32>,
    %c24_56 = arith.constant 24 : index
    %c0_57 = arith.constant 0 : index
    %105 = vector.load %arg15[%c24_56, %c0_57] : memref<40x128xf32, #tpu.memory_space<vmem>>, vector<8x128xf32>
    %cst_58 = arith.constant dense<0.000000e+00> : vector<8x128xf32>
    %106 = tpu.matmul %103, %37, %cst_58 {dimension_numbers = #tpu.dot_dimension_numbers<[1], [0], [0], [1], [0, 0, 1, 1], [], []>} : vector<8x32xf32>, vector<32x128xf32>, vector<8x128xf32> -> vector<8x128xf32>
    %107 = arith.addf %105, %106 : vector<8x128xf32>
    %108 = arith.negf %107 : vector<8x128xf32>
    %109 = math.exp %108 : vector<8x128xf32>
    %cst_59 = arith.constant 1.000000e+00 : f32
    %110 = vector.broadcast %cst_59 : f32 to vector<8x128xf32>
    %111 = arith.addf %110, %109 : vector<8x128xf32>
    %112 = arith.divf %110, %111 : vector<8x128xf32>
    %113 = vector.extract_strided_slice %112 {offsets = [0, 0], sizes = [8, 32], strides = [1, 1]} : vector<8x128xf32> to vector<8x32xf32>
    %114 = vector.extract_strided_slice %112 {offsets = [0, 32], sizes = [8, 32], strides = [1, 1]} : vector<8x128xf32> to vector<8x32xf32>
    %115 = vector.extract_strided_slice %112 {offsets = [0, 64], sizes = [8, 32], strides = [1, 1]} : vector<8x128xf32> to vector<8x32xf32>
    %cst_60 = arith.constant 2.000000e+00 : f32
    %116 = vector.broadcast %cst_60 : f32 to vector<8x32xf32>
    %117 = arith.mulf %116, %115 : vector<8x32xf32>
    %cst_61 = arith.constant 1.000000e+00 : f32
    %118 = vector.broadcast %cst_61 : f32 to vector<8x32xf32>
    %119 = arith.subf %117, %118 : vector<8x32xf32>
    %120 = vector.extract_strided_slice %112 {offsets = [0, 96], sizes = [8, 32], strides = [1, 1]} : vector<8x128xf32> to vector<8x32xf32>
    %121 = arith.mulf %114, %101 : vector<8x32xf32>
    %122 = arith.mulf %113, %119 : vector<8x32xf32>
    %123 = arith.addf %121, %122 : vector<8x32xf32>
    %124 = math.tanh %123 : vector<8x32xf32>
    %125 = arith.mulf %120, %124 : vector<8x32xf32>
    %c24_62 = arith.constant 24 : index
    %c0_63 = arith.constant 0 : index
    %126 = vector.load %arg16[%c24_62, %c0_63] : memref<40x32xf32, #tpu.memory_space<vmem>>, vector<8x32xf32>
    tpu.vector_store %arg16[%c24_62, %c0_63], %125 {strides = array<i32>} : memref<40x32xf32, #tpu.memory_space<vmem>>, vector<8x32xf32>,
    %c32_64 = arith.constant 32 : index
    %c0_65 = arith.constant 0 : index
    %127 = vector.load %arg15[%c32_64, %c0_65] : memref<40x128xf32, #tpu.memory_space<vmem>>, vector<8x128xf32>
    %cst_66 = arith.constant dense<0.000000e+00> : vector<8x128xf32>
    %128 = tpu.matmul %125, %37, %cst_66 {dimension_numbers = #tpu.dot_dimension_numbers<[1], [0], [0], [1], [0, 0, 1, 1], [], []>} : vector<8x32xf32>, vector<32x128xf32>, vector<8x128xf32> -> vector<8x128xf32>
    %129 = arith.addf %127, %128 : vector<8x128xf32>
    %130 = arith.negf %129 : vector<8x128xf32>
    %131 = math.exp %130 : vector<8x128xf32>
    %cst_67 = arith.constant 1.000000e+00 : f32
    %132 = vector.broadcast %cst_67 : f32 to vector<8x128xf32>
    %133 = arith.addf %132, %131 : vector<8x128xf32>
    %134 = arith.divf %132, %133 : vector<8x128xf32>
    %135 = vector.extract_strided_slice %134 {offsets = [0, 0], sizes = [8, 32], strides = [1, 1]} : vector<8x128xf32> to vector<8x32xf32>
    %136 = vector.extract_strided_slice %134 {offsets = [0, 32], sizes = [8, 32], strides = [1, 1]} : vector<8x128xf32> to vector<8x32xf32>
    %137 = vector.extract_strided_slice %134 {offsets = [0, 64], sizes = [8, 32], strides = [1, 1]} : vector<8x128xf32> to vector<8x32xf32>
    %cst_68 = arith.constant 2.000000e+00 : f32
    %138 = vector.broadcast %cst_68 : f32 to vector<8x32xf32>
    %139 = arith.mulf %138, %137 : vector<8x32xf32>
    %cst_69 = arith.constant 1.000000e+00 : f32
    %140 = vector.broadcast %cst_69 : f32 to vector<8x32xf32>
    %141 = arith.subf %139, %140 : vector<8x32xf32>
    %142 = vector.extract_strided_slice %134 {offsets = [0, 96], sizes = [8, 32], strides = [1, 1]} : vector<8x128xf32> to vector<8x32xf32>
    %143 = arith.mulf %136, %123 : vector<8x32xf32>
    %144 = arith.mulf %135, %141 : vector<8x32xf32>
    %145 = arith.addf %143, %144 : vector<8x32xf32>
    %146 = math.tanh %145 : vector<8x32xf32>
    %147 = arith.mulf %142, %146 : vector<8x32xf32>
    %c32_70 = arith.constant 32 : index
    %c0_71 = arith.constant 0 : index
    %148 = vector.load %arg16[%c32_70, %c0_71] : memref<40x32xf32, #tpu.memory_space<vmem>>, vector<8x32xf32>
    tpu.vector_store %arg16[%c32_70, %c0_71], %147 {strides = array<i32>} : memref<40x32xf32, #tpu.memory_space<vmem>>, vector<8x32xf32>,
    %c0_72 = arith.constant 0 : index
    %c0_73 = arith.constant 0 : index
    %149 = vector.load %arg8[%c0_72, %c0_73] : memref<32x128xf32, #tpu.memory_space<vmem>>, vector<32x128xf32>
    %c0_74 = arith.constant 0 : index
    %c0_75 = arith.constant 0 : index
    %150 = vector.load %arg9[%c0_74, %c0_75] : memref<32x128xf32, #tpu.memory_space<vmem>>, vector<32x128xf32>
    %c0_76 = arith.constant 0 : index
    %c0_77 = arith.constant 0 : index
    %151 = vector.load %arg10[%c0_76, %c0_77] : memref<1x128xf32, #tpu.memory_space<vmem>>, vector<1x128xf32>
    %c0_78 = arith.constant 0 : index
    %c0_79 = arith.constant 0 : index
    %152 = vector.load %arg16[%c0_78, %c0_79] : memref<40x32xf32, #tpu.memory_space<vmem>>, vector<40x32xf32>
    %cst_80 = arith.constant dense<0.000000e+00> : vector<40x128xf32>
    %153 = tpu.matmul %152, %149, %cst_80 {dimension_numbers = #tpu.dot_dimension_numbers<[1], [0], [0], [1], [0, 0, 1, 1], [], []>} : vector<40x32xf32>, vector<32x128xf32>, vector<40x128xf32> -> vector<40x128xf32>
    %154 = vector.broadcast %151 : vector<1x128xf32> to vector<40x128xf32>
    %155 = arith.addf %153, %154 : vector<40x128xf32>
    %c0_81 = arith.constant 0 : index
    %c0_82 = arith.constant 0 : index
    %156 = vector.load %arg15[%c0_81, %c0_82] : memref<40x128xf32, #tpu.memory_space<vmem>>, vector<40x128xf32>
    tpu.vector_store %arg15[%c0_81, %c0_82], %155 {strides = array<i32>} : memref<40x128xf32, #tpu.memory_space<vmem>>, vector<40x128xf32>,
    %c0_83 = arith.constant 0 : index
    %c0_84 = arith.constant 0 : index
    %157 = vector.load %arg15[%c0_83, %c0_84] : memref<40x128xf32, #tpu.memory_space<vmem>>, vector<8x128xf32>
    %158 = arith.negf %157 : vector<8x128xf32>
    %159 = math.exp %158 : vector<8x128xf32>
    %cst_85 = arith.constant 1.000000e+00 : f32
    %160 = vector.broadcast %cst_85 : f32 to vector<8x128xf32>
    %161 = arith.addf %160, %159 : vector<8x128xf32>
    %162 = arith.divf %160, %161 : vector<8x128xf32>
    %163 = vector.extract_strided_slice %162 {offsets = [0, 0], sizes = [8, 32], strides = [1, 1]} : vector<8x128xf32> to vector<8x32xf32>
    %164 = vector.extract_strided_slice %162 {offsets = [0, 64], sizes = [8, 32], strides = [1, 1]} : vector<8x128xf32> to vector<8x32xf32>
    %cst_86 = arith.constant 2.000000e+00 : f32
    %165 = vector.broadcast %cst_86 : f32 to vector<8x32xf32>
    %166 = arith.mulf %165, %164 : vector<8x32xf32>
    %cst_87 = arith.constant 1.000000e+00 : f32
    %167 = vector.broadcast %cst_87 : f32 to vector<8x32xf32>
    %168 = arith.subf %166, %167 : vector<8x32xf32>
    %169 = vector.extract_strided_slice %162 {offsets = [0, 96], sizes = [8, 32], strides = [1, 1]} : vector<8x128xf32> to vector<8x32xf32>
    %170 = arith.mulf %163, %168 : vector<8x32xf32>
    %171 = math.tanh %170 : vector<8x32xf32>
    %172 = arith.mulf %169, %171 : vector<8x32xf32>
    %c0_88 = arith.constant 0 : index
    %c0_89 = arith.constant 0 : index
    %173 = vector.load %arg16[%c0_88, %c0_89] : memref<40x32xf32, #tpu.memory_space<vmem>>, vector<8x32xf32>
    tpu.vector_store %arg16[%c0_88, %c0_89], %172 {strides = array<i32>} : memref<40x32xf32, #tpu.memory_space<vmem>>, vector<8x32xf32>,
    %c8_90 = arith.constant 8 : index
    %c0_91 = arith.constant 0 : index
    %174 = vector.load %arg15[%c8_90, %c0_91] : memref<40x128xf32, #tpu.memory_space<vmem>>, vector<8x128xf32>
    %cst_92 = arith.constant dense<0.000000e+00> : vector<8x128xf32>
    %175 = tpu.matmul %172, %150, %cst_92 {dimension_numbers = #tpu.dot_dimension_numbers<[1], [0], [0], [1], [0, 0, 1, 1], [], []>} : vector<8x32xf32>, vector<32x128xf32>, vector<8x128xf32> -> vector<8x128xf32>
    %176 = arith.addf %174, %175 : vector<8x128xf32>
    %177 = arith.negf %176 : vector<8x128xf32>
    %178 = math.exp %177 : vector<8x128xf32>
    %cst_93 = arith.constant 1.000000e+00 : f32
    %179 = vector.broadcast %cst_93 : f32 to vector<8x128xf32>
    %180 = arith.addf %179, %178 : vector<8x128xf32>
    %181 = arith.divf %179, %180 : vector<8x128xf32>
    %182 = vector.extract_strided_slice %181 {offsets = [0, 0], sizes = [8, 32], strides = [1, 1]} : vector<8x128xf32> to vector<8x32xf32>
    %183 = vector.extract_strided_slice %181 {offsets = [0, 32], sizes = [8, 32], strides = [1, 1]} : vector<8x128xf32> to vector<8x32xf32>
    %184 = vector.extract_strided_slice %181 {offsets = [0, 64], sizes = [8, 32], strides = [1, 1]} : vector<8x128xf32> to vector<8x32xf32>
    %cst_94 = arith.constant 2.000000e+00 : f32
    %185 = vector.broadcast %cst_94 : f32 to vector<8x32xf32>
    %186 = arith.mulf %185, %184 : vector<8x32xf32>
    %cst_95 = arith.constant 1.000000e+00 : f32
    %187 = vector.broadcast %cst_95 : f32 to vector<8x32xf32>
    %188 = arith.subf %186, %187 : vector<8x32xf32>
    %189 = vector.extract_strided_slice %181 {offsets = [0, 96], sizes = [8, 32], strides = [1, 1]} : vector<8x128xf32> to vector<8x32xf32>
    %190 = arith.mulf %183, %170 : vector<8x32xf32>
    %191 = arith.mulf %182, %188 : vector<8x32xf32>
    %192 = arith.addf %190, %191 : vector<8x32xf32>
    %193 = math.tanh %192 : vector<8x32xf32>
    %194 = arith.mulf %189, %193 : vector<8x32xf32>
    %c8_96 = arith.constant 8 : index
    %c0_97 = arith.constant 0 : index
    %195 = vector.load %arg16[%c8_96, %c0_97] : memref<40x32xf32, #tpu.memory_space<vmem>>, vector<8x32xf32>
    tpu.vector_store %arg16[%c8_96, %c0_97], %194 {strides = array<i32>} : memref<40x32xf32, #tpu.memory_space<vmem>>, vector<8x32xf32>,
    %c16_98 = arith.constant 16 : index
    %c0_99 = arith.constant 0 : index
    %196 = vector.load %arg15[%c16_98, %c0_99] : memref<40x128xf32, #tpu.memory_space<vmem>>, vector<8x128xf32>
    %cst_100 = arith.constant dense<0.000000e+00> : vector<8x128xf32>
    %197 = tpu.matmul %194, %150, %cst_100 {dimension_numbers = #tpu.dot_dimension_numbers<[1], [0], [0], [1], [0, 0, 1, 1], [], []>} : vector<8x32xf32>, vector<32x128xf32>, vector<8x128xf32> -> vector<8x128xf32>
    %198 = arith.addf %196, %197 : vector<8x128xf32>
    %199 = arith.negf %198 : vector<8x128xf32>
    %200 = math.exp %199 : vector<8x128xf32>
    %cst_101 = arith.constant 1.000000e+00 : f32
    %201 = vector.broadcast %cst_101 : f32 to vector<8x128xf32>
    %202 = arith.addf %201, %200 : vector<8x128xf32>
    %203 = arith.divf %201, %202 : vector<8x128xf32>
    %204 = vector.extract_strided_slice %203 {offsets = [0, 0], sizes = [8, 32], strides = [1, 1]} : vector<8x128xf32> to vector<8x32xf32>
    %205 = vector.extract_strided_slice %203 {offsets = [0, 32], sizes = [8, 32], strides = [1, 1]} : vector<8x128xf32> to vector<8x32xf32>
    %206 = vector.extract_strided_slice %203 {offsets = [0, 64], sizes = [8, 32], strides = [1, 1]} : vector<8x128xf32> to vector<8x32xf32>
    %cst_102 = arith.constant 2.000000e+00 : f32
    %207 = vector.broadcast %cst_102 : f32 to vector<8x32xf32>
    %208 = arith.mulf %207, %206 : vector<8x32xf32>
    %cst_103 = arith.constant 1.000000e+00 : f32
    %209 = vector.broadcast %cst_103 : f32 to vector<8x32xf32>
    %210 = arith.subf %208, %209 : vector<8x32xf32>
    %211 = vector.extract_strided_slice %203 {offsets = [0, 96], sizes = [8, 32], strides = [1, 1]} : vector<8x128xf32> to vector<8x32xf32>
    %212 = arith.mulf %205, %192 : vector<8x32xf32>
    %213 = arith.mulf %204, %210 : vector<8x32xf32>
    %214 = arith.addf %212, %213 : vector<8x32xf32>
    %215 = math.tanh %214 : vector<8x32xf32>
    %216 = arith.mulf %211, %215 : vector<8x32xf32>
    %c16_104 = arith.constant 16 : index
    %c0_105 = arith.constant 0 : index
    %217 = vector.load %arg16[%c16_104, %c0_105] : memref<40x32xf32, #tpu.memory_space<vmem>>, vector<8x32xf32>
    tpu.vector_store %arg16[%c16_104, %c0_105], %216 {strides = array<i32>} : memref<40x32xf32, #tpu.memory_space<vmem>>, vector<8x32xf32>,
    %c24_106 = arith.constant 24 : index
    %c0_107 = arith.constant 0 : index
    %218 = vector.load %arg15[%c24_106, %c0_107] : memref<40x128xf32, #tpu.memory_space<vmem>>, vector<8x128xf32>
    %cst_108 = arith.constant dense<0.000000e+00> : vector<8x128xf32>
    %219 = tpu.matmul %216, %150, %cst_108 {dimension_numbers = #tpu.dot_dimension_numbers<[1], [0], [0], [1], [0, 0, 1, 1], [], []>} : vector<8x32xf32>, vector<32x128xf32>, vector<8x128xf32> -> vector<8x128xf32>
    %220 = arith.addf %218, %219 : vector<8x128xf32>
    %221 = arith.negf %220 : vector<8x128xf32>
    %222 = math.exp %221 : vector<8x128xf32>
    %cst_109 = arith.constant 1.000000e+00 : f32
    %223 = vector.broadcast %cst_109 : f32 to vector<8x128xf32>
    %224 = arith.addf %223, %222 : vector<8x128xf32>
    %225 = arith.divf %223, %224 : vector<8x128xf32>
    %226 = vector.extract_strided_slice %225 {offsets = [0, 0], sizes = [8, 32], strides = [1, 1]} : vector<8x128xf32> to vector<8x32xf32>
    %227 = vector.extract_strided_slice %225 {offsets = [0, 32], sizes = [8, 32], strides = [1, 1]} : vector<8x128xf32> to vector<8x32xf32>
    %228 = vector.extract_strided_slice %225 {offsets = [0, 64], sizes = [8, 32], strides = [1, 1]} : vector<8x128xf32> to vector<8x32xf32>
    %cst_110 = arith.constant 2.000000e+00 : f32
    %229 = vector.broadcast %cst_110 : f32 to vector<8x32xf32>
    %230 = arith.mulf %229, %228 : vector<8x32xf32>
    %cst_111 = arith.constant 1.000000e+00 : f32
    %231 = vector.broadcast %cst_111 : f32 to vector<8x32xf32>
    %232 = arith.subf %230, %231 : vector<8x32xf32>
    %233 = vector.extract_strided_slice %225 {offsets = [0, 96], sizes = [8, 32], strides = [1, 1]} : vector<8x128xf32> to vector<8x32xf32>
    %234 = arith.mulf %227, %214 : vector<8x32xf32>
    %235 = arith.mulf %226, %232 : vector<8x32xf32>
    %236 = arith.addf %234, %235 : vector<8x32xf32>
    %237 = math.tanh %236 : vector<8x32xf32>
    %238 = arith.mulf %233, %237 : vector<8x32xf32>
    %c24_112 = arith.constant 24 : index
    %c0_113 = arith.constant 0 : index
    %239 = vector.load %arg16[%c24_112, %c0_113] : memref<40x32xf32, #tpu.memory_space<vmem>>, vector<8x32xf32>
    tpu.vector_store %arg16[%c24_112, %c0_113], %238 {strides = array<i32>} : memref<40x32xf32, #tpu.memory_space<vmem>>, vector<8x32xf32>,
    %c32_114 = arith.constant 32 : index
    %c0_115 = arith.constant 0 : index
    %240 = vector.load %arg15[%c32_114, %c0_115] : memref<40x128xf32, #tpu.memory_space<vmem>>, vector<8x128xf32>
    %cst_116 = arith.constant dense<0.000000e+00> : vector<8x128xf32>
    %241 = tpu.matmul %238, %150, %cst_116 {dimension_numbers = #tpu.dot_dimension_numbers<[1], [0], [0], [1], [0, 0, 1, 1], [], []>} : vector<8x32xf32>, vector<32x128xf32>, vector<8x128xf32> -> vector<8x128xf32>
    %242 = arith.addf %240, %241 : vector<8x128xf32>
    %243 = arith.negf %242 : vector<8x128xf32>
    %244 = math.exp %243 : vector<8x128xf32>
    %cst_117 = arith.constant 1.000000e+00 : f32
    %245 = vector.broadcast %cst_117 : f32 to vector<8x128xf32>
    %246 = arith.addf %245, %244 : vector<8x128xf32>
    %247 = arith.divf %245, %246 : vector<8x128xf32>
    %248 = vector.extract_strided_slice %247 {offsets = [0, 0], sizes = [8, 32], strides = [1, 1]} : vector<8x128xf32> to vector<8x32xf32>
    %249 = vector.extract_strided_slice %247 {offsets = [0, 32], sizes = [8, 32], strides = [1, 1]} : vector<8x128xf32> to vector<8x32xf32>
    %250 = vector.extract_strided_slice %247 {offsets = [0, 64], sizes = [8, 32], strides = [1, 1]} : vector<8x128xf32> to vector<8x32xf32>
    %cst_118 = arith.constant 2.000000e+00 : f32
    %251 = vector.broadcast %cst_118 : f32 to vector<8x32xf32>
    %252 = arith.mulf %251, %250 : vector<8x32xf32>
    %cst_119 = arith.constant 1.000000e+00 : f32
    %253 = vector.broadcast %cst_119 : f32 to vector<8x32xf32>
    %254 = arith.subf %252, %253 : vector<8x32xf32>
    %255 = vector.extract_strided_slice %247 {offsets = [0, 96], sizes = [8, 32], strides = [1, 1]} : vector<8x128xf32> to vector<8x32xf32>
    %256 = arith.mulf %249, %236 : vector<8x32xf32>
    %257 = arith.mulf %248, %254 : vector<8x32xf32>
    %258 = arith.addf %256, %257 : vector<8x32xf32>
    %259 = math.tanh %258 : vector<8x32xf32>
    %260 = arith.mulf %255, %259 : vector<8x32xf32>
    %c32_120 = arith.constant 32 : index
    %c0_121 = arith.constant 0 : index
    %261 = vector.load %arg16[%c32_120, %c0_121] : memref<40x32xf32, #tpu.memory_space<vmem>>, vector<8x32xf32>
    tpu.vector_store %arg16[%c32_120, %c0_121], %260 {strides = array<i32>} : memref<40x32xf32, #tpu.memory_space<vmem>>, vector<8x32xf32>,
    %cst_122 = arith.constant 0.000000e+00 : f32
    %262 = vector.broadcast %cst_122 : f32 to vector<8x32xf32>
    %c0_123 = arith.constant 0 : index
    %c0_124 = arith.constant 0 : index
    %263 = vector.load %arg17[%c0_123, %c0_124] : memref<8x32xf32, #tpu.memory_space<vmem>>, vector<8x32xf32>
    tpu.vector_store %arg17[%c0_123, %c0_124], %262 {strides = array<i32>} : memref<8x32xf32, #tpu.memory_space<vmem>>, vector<8x32xf32>,
    %c0_125 = arith.constant 0 : index
    %264 = memref.load %arg2[%c0_125] : memref<8xi32, #tpu.memory_space<smem>>
    %265 = arith.index_cast %264 : i32 to index
    %c0_126 = arith.constant 0 : index
    %266 = vector.load %arg16[%265, %c0_126] : memref<40x32xf32, #tpu.memory_space<vmem>>, vector<1x32xf32>
    %c0_127 = arith.constant 0 : index
    %c0_128 = arith.constant 0 : index
    %267 = vector.load %arg17[%c0_127, %c0_128] : memref<8x32xf32, #tpu.memory_space<vmem>>, vector<1x32xf32>
    tpu.vector_store %arg17[%c0_127, %c0_128], %266 {strides = array<i32>} : memref<8x32xf32, #tpu.memory_space<vmem>>, vector<1x32xf32>,
    %c1_129 = arith.constant 1 : index
    %268 = memref.load %arg2[%c1_129] : memref<8xi32, #tpu.memory_space<smem>>
    %269 = arith.index_cast %268 : i32 to index
    %c0_130 = arith.constant 0 : index
    %270 = vector.load %arg16[%269, %c0_130] : memref<40x32xf32, #tpu.memory_space<vmem>>, vector<1x32xf32>
    %c1_131 = arith.constant 1 : index
    %c0_132 = arith.constant 0 : index
    %271 = vector.load %arg17[%c1_131, %c0_132] : memref<8x32xf32, #tpu.memory_space<vmem>>, vector<1x32xf32>
    tpu.vector_store %arg17[%c1_131, %c0_132], %270 {strides = array<i32>} : memref<8x32xf32, #tpu.memory_space<vmem>>, vector<1x32xf32>,
    %c2_133 = arith.constant 2 : index
    %272 = memref.load %arg2[%c2_133] : memref<8xi32, #tpu.memory_space<smem>>
    %273 = arith.index_cast %272 : i32 to index
    %c0_134 = arith.constant 0 : index
    %274 = vector.load %arg16[%273, %c0_134] : memref<40x32xf32, #tpu.memory_space<vmem>>, vector<1x32xf32>
    %c2_135 = arith.constant 2 : index
    %c0_136 = arith.constant 0 : index
    %275 = vector.load %arg17[%c2_135, %c0_136] : memref<8x32xf32, #tpu.memory_space<vmem>>, vector<1x32xf32>
    tpu.vector_store %arg17[%c2_135, %c0_136], %274 {strides = array<i32>} : memref<8x32xf32, #tpu.memory_space<vmem>>, vector<1x32xf32>,
    %c3_137 = arith.constant 3 : index
    %276 = memref.load %arg2[%c3_137] : memref<8xi32, #tpu.memory_space<smem>>
    %277 = arith.index_cast %276 : i32 to index
    %c0_138 = arith.constant 0 : index
    %278 = vector.load %arg16[%277, %c0_138] : memref<40x32xf32, #tpu.memory_space<vmem>>, vector<1x32xf32>
    %c3_139 = arith.constant 3 : index
    %c0_140 = arith.constant 0 : index
    %279 = vector.load %arg17[%c3_139, %c0_140] : memref<8x32xf32, #tpu.memory_space<vmem>>, vector<1x32xf32>
    tpu.vector_store %arg17[%c3_139, %c0_140], %278 {strides = array<i32>} : memref<8x32xf32, #tpu.memory_space<vmem>>, vector<1x32xf32>,
    %c4_141 = arith.constant 4 : index
    %280 = memref.load %arg2[%c4_141] : memref<8xi32, #tpu.memory_space<smem>>
    %281 = arith.index_cast %280 : i32 to index
    %c0_142 = arith.constant 0 : index
    %282 = vector.load %arg16[%281, %c0_142] : memref<40x32xf32, #tpu.memory_space<vmem>>, vector<1x32xf32>
    %c4_143 = arith.constant 4 : index
    %c0_144 = arith.constant 0 : index
    %283 = vector.load %arg17[%c4_143, %c0_144] : memref<8x32xf32, #tpu.memory_space<vmem>>, vector<1x32xf32>
    tpu.vector_store %arg17[%c4_143, %c0_144], %282 {strides = array<i32>} : memref<8x32xf32, #tpu.memory_space<vmem>>, vector<1x32xf32>,
    %c5_145 = arith.constant 5 : index
    %284 = memref.load %arg2[%c5_145] : memref<8xi32, #tpu.memory_space<smem>>
    %285 = arith.index_cast %284 : i32 to index
    %c0_146 = arith.constant 0 : index
    %286 = vector.load %arg16[%285, %c0_146] : memref<40x32xf32, #tpu.memory_space<vmem>>, vector<1x32xf32>
    %c5_147 = arith.constant 5 : index
    %c0_148 = arith.constant 0 : index
    %287 = vector.load %arg17[%c5_147, %c0_148] : memref<8x32xf32, #tpu.memory_space<vmem>>, vector<1x32xf32>
    tpu.vector_store %arg17[%c5_147, %c0_148], %286 {strides = array<i32>} : memref<8x32xf32, #tpu.memory_space<vmem>>, vector<1x32xf32>,
    %c6_149 = arith.constant 6 : index
    %288 = memref.load %arg2[%c6_149] : memref<8xi32, #tpu.memory_space<smem>>
    %289 = arith.index_cast %288 : i32 to index
    %c0_150 = arith.constant 0 : index
    %290 = vector.load %arg16[%289, %c0_150] : memref<40x32xf32, #tpu.memory_space<vmem>>, vector<1x32xf32>
    %c6_151 = arith.constant 6 : index
    %c0_152 = arith.constant 0 : index
    %291 = vector.load %arg17[%c6_151, %c0_152] : memref<8x32xf32, #tpu.memory_space<vmem>>, vector<1x32xf32>
    tpu.vector_store %arg17[%c6_151, %c0_152], %290 {strides = array<i32>} : memref<8x32xf32, #tpu.memory_space<vmem>>, vector<1x32xf32>,
    %c7_153 = arith.constant 7 : index
    %292 = memref.load %arg2[%c7_153] : memref<8xi32, #tpu.memory_space<smem>>
    %293 = arith.index_cast %292 : i32 to index
    %c0_154 = arith.constant 0 : index
    %294 = vector.load %arg16[%293, %c0_154] : memref<40x32xf32, #tpu.memory_space<vmem>>, vector<1x32xf32>
    %c7_155 = arith.constant 7 : index
    %c0_156 = arith.constant 0 : index
    %295 = vector.load %arg17[%c7_155, %c0_156] : memref<8x32xf32, #tpu.memory_space<vmem>>, vector<1x32xf32>
    tpu.vector_store %arg17[%c7_155, %c0_156], %294 {strides = array<i32>} : memref<8x32xf32, #tpu.memory_space<vmem>>, vector<1x32xf32>,
    %c0_157 = arith.constant 0 : index
    %c0_158 = arith.constant 0 : index
    %296 = vector.load %arg17[%c0_157, %c0_158] : memref<8x32xf32, #tpu.memory_space<vmem>>, vector<8x32xf32>
    %c0_159 = arith.constant 0 : index
    %c0_160 = arith.constant 0 : index
    %297 = vector.load %arg11[%c0_159, %c0_160] : memref<32x128xf32, #tpu.memory_space<vmem>>, vector<32x128xf32>
    %cst_161 = arith.constant dense<0.000000e+00> : vector<8x128xf32>
    %298 = tpu.matmul %296, %297, %cst_161 {dimension_numbers = #tpu.dot_dimension_numbers<[1], [0], [0], [1], [0, 0, 1, 1], [], []>} : vector<8x32xf32>, vector<32x128xf32>, vector<8x128xf32> -> vector<8x128xf32>
    %c0_162 = arith.constant 0 : index
    %c0_163 = arith.constant 0 : index
    %299 = vector.load %arg12[%c0_162, %c0_163] : memref<1x128xf32, #tpu.memory_space<vmem>>, vector<1x128xf32>
    %300 = vector.broadcast %299 : vector<1x128xf32> to vector<8x128xf32>
    %301 = arith.addf %298, %300 : vector<8x128xf32>
    %c0_164 = arith.constant 0 : index
    %c0_165 = arith.constant 0 : index
    %302 = vector.load %arg13[%c0_164, %c0_165] : memref<8x128xf32, #tpu.memory_space<vmem>>, vector<8x128xf32>
    tpu.vector_store %arg13[%c0_164, %c0_165], %301 {strides = array<i32>} : memref<8x128xf32, #tpu.memory_space<vmem>>, vector<8x128xf32>,
    return
  }
  func.func @transform_0(%arg0: i32, %arg1: memref<8xi32, #tpu.memory_space<smem>>, %arg2: memref<8xi32, #tpu.memory_space<smem>>) -> (i32, i32) {
    %c0_i32 = arith.constant 0 : i32
    %c0_i32_0 = arith.constant 0 : i32
    %c0_i32_1 = arith.constant 0 : i32
    return %c0_i32, %c0_i32_0 : i32, i32
  }
  func.func @transform_1(%arg0: i32, %arg1: memref<8xi32, #tpu.memory_space<smem>>, %arg2: memref<8xi32, #tpu.memory_space<smem>>) -> (i32, i32) {
    %c0_i32 = arith.constant 0 : i32
    %c0_i32_0 = arith.constant 0 : i32
    %c0_i32_1 = arith.constant 0 : i32
    return %c0_i32, %c0_i32_0 : i32, i32
  }
  func.func @transform_2(%arg0: i32, %arg1: memref<8xi32, #tpu.memory_space<smem>>, %arg2: memref<8xi32, #tpu.memory_space<smem>>) -> (i32, i32) {
    %c0_i32 = arith.constant 0 : i32
    %c0_i32_0 = arith.constant 0 : i32
    %c0_i32_1 = arith.constant 0 : i32
    return %c0_i32, %c0_i32_0 : i32, i32
  }
  func.func @transform_3(%arg0: i32, %arg1: memref<8xi32, #tpu.memory_space<smem>>, %arg2: memref<8xi32, #tpu.memory_space<smem>>) -> (i32, i32) {
    %c0_i32 = arith.constant 0 : i32
    %c0_i32_0 = arith.constant 0 : i32
    %c0_i32_1 = arith.constant 0 : i32
    return %c0_i32, %c0_i32_0 : i32, i32
  }
  func.func @transform_4(%arg0: i32, %arg1: memref<8xi32, #tpu.memory_space<smem>>, %arg2: memref<8xi32, #tpu.memory_space<smem>>) -> (i32, i32) {
    %c0_i32 = arith.constant 0 : i32
    %c0_i32_0 = arith.constant 0 : i32
    %c0_i32_1 = arith.constant 0 : i32
    return %c0_i32, %c0_i32_0 : i32, i32
  }
  func.func @transform_5(%arg0: i32, %arg1: memref<8xi32, #tpu.memory_space<smem>>, %arg2: memref<8xi32, #tpu.memory_space<smem>>) -> (i32, i32) {
    %c0_i32 = arith.constant 0 : i32
    %c0_i32_0 = arith.constant 0 : i32
    %c0_i32_1 = arith.constant 0 : i32
    return %c0_i32, %c0_i32_0 : i32, i32
  }
  func.func @transform_6(%arg0: i32, %arg1: memref<8xi32, #tpu.memory_space<smem>>, %arg2: memref<8xi32, #tpu.memory_space<smem>>) -> (i32, i32) {
    %c0_i32 = arith.constant 0 : i32
    %c0_i32_0 = arith.constant 0 : i32
    %c0_i32_1 = arith.constant 0 : i32
    return %c0_i32, %c0_i32_0 : i32, i32
  }
  func.func @transform_7(%arg0: i32, %arg1: memref<8xi32, #tpu.memory_space<smem>>, %arg2: memref<8xi32, #tpu.memory_space<smem>>) -> (i32, i32) {
    %c0_i32 = arith.constant 0 : i32
    %c0_i32_0 = arith.constant 0 : i32
    %c0_i32_1 = arith.constant 0 : i32
    return %c0_i32, %c0_i32_0 : i32, i32
  }
  func.func @transform_8(%arg0: i32, %arg1: memref<8xi32, #tpu.memory_space<smem>>, %arg2: memref<8xi32, #tpu.memory_space<smem>>) -> (i32, i32) {
    %c0_i32 = arith.constant 0 : i32
    %c0_i32_0 = arith.constant 0 : i32
    %c0_i32_1 = arith.constant 0 : i32
    return %c0_i32, %c0_i32_0 : i32, i32
  }
  func.func @transform_9(%arg0: i32, %arg1: memref<8xi32, #tpu.memory_space<smem>>, %arg2: memref<8xi32, #tpu.memory_space<smem>>) -> (i32, i32) {
    %c0_i32 = arith.constant 0 : i32
    %c0_i32_0 = arith.constant 0 : i32
    %c0_i32_1 = arith.constant 0 : i32
    return %c0_i32, %c0_i32_0 : i32, i32
  }
  func.func @transform_10(%arg0: i32, %arg1: memref<8xi32, #tpu.memory_space<smem>>, %arg2: memref<8xi32, #tpu.memory_space<smem>>) -> (i32, i32) {
    %c0_i32 = arith.constant 0 : i32
    %c0_i32_0 = arith.constant 0 : i32
    %c0_i32_1 = arith.constant 0 : i32
    return %c0_i32, %c0_i32_0 : i32, i32
  }
}

</mosaic_0001>

<bundles_post_ra>
// kernel: tpu_custom_call.1
= control target key start
LH: loop header
LB: loop body
LE: loop exit
PB: predicated region body
PF: predicated region fallthrough
CT: control target
= control target key end

     0   :  { %s2479_s0 = inlined_call_operand.hbm [shape: s32[8], index: 0, kind: input, shape index: {}]   ;;  %s2480_s2 = inlined_call_operand.hbm [shape: f32[16,32], index: 2, kind: input, shape index: {}]   ;;  %s2481_s3 = inlined_call_operand.vmem [shape: f32[2,32], index: 3, kind: input, shape index: {}]   ;;  %s2482_s4 = inlined_call_operand.hbm [shape: f32[32,128], index: 4, kind: input, shape index: {}]   ;;  %s2483_s5 = inlined_call_operand.hbm [shape: f32[32,128], index: 5, kind: input, shape index: {}]   ;;  %s2484_s6 = inlined_call_operand.vmem [shape: f32[1,128], index: 6, kind: input, shape index: {}]   ;;  %s2485_s7 = inlined_call_operand.hbm [shape: f32[32,128], index: 7, kind: input, shape index: {}]   ;;  %s2486_s8 = inlined_call_operand.hbm [shape: f32[32,128], index: 8, kind: input, shape index: {}]   ;;  %s2487_s9 = inlined_call_operand.vmem [shape: f32[1,128], index: 9, kind: input, shape index: {}]   ;;  %s2488_s10 = inlined_call_operand.vmem [shape: f32[32,128], index: 10, kind: input, shape index: {}]   ;;  %s2489_s11 = inlined_call_operand.vmem [shape: f32[1,128], index: 11, kind: input, shape index: {}]   ;;  %s2490_s12 = inlined_call_operand.hbm [shape: f32[8,128], index: 12, kind: output, shape index: {}]   ;;  %s2491_s1 = inlined_call_operand.vmem [shape: s32[8], index: 1, kind: input, shape index: {}]  }
   0x1   :  { %s1888_s23 = scalar_lea.hbm %s2479_s0, 16 }
   0x2   :  { %p1889_p0 = scmp.ne.s32.totalorder %s2479_s0, %s1888_s23  ;;  %p1892_p1 = scmp.lt.u32.totalorder %s1888_s23, %s2479_s0 }
   0x4   :  { %p1894_p2 = pnand %p1892_p1, %p1889_p0 }
   0x6   :  { %1897 = shalt.err (!%p1894_p2)  }
   0x7   :  { %s2052_s28 = smov [#allocation7]   ;;  %s19_s15 = sshll.u32 %s2491_s1, 4  ;;  %s20_s15 = int_to_ptr.vmem [resolvable:$true] %s19_s15 }
   0x8   :  { %18 = dma.hbm_to_smem %s2479_s0, 16, %s2052_s28, [#allocation6] }
   0x9   :  { %s1898_s16 = scalar_lea.vmem %s20_s15, 16  ;;  %p1903_p4 = scmp.lt.s32.totalorder %s20_s15, %s20_s15 }
   0xa   :  { %p1899_p3 = scmp.ne.s32.totalorder %s20_s15, %s1898_s16  ;;  %p1904_p5 = scmp.lt.s32.totalorder %s1898_s16, %s1898_s16 }
   0xc   :  { %p1905_p6 = por %p1904_p5, %p1903_p4 }
   0xe   :  { %p1906_p7 = pnand %p1905_p6, %p1899_p3 }
  0x10   :  { %1909 = shalt.err (!%p1906_p7)  }
  0x11   :  { %s2053_s17 = smov [#allocation8]  }
  0x12   :  { %22 = dma.vmem_to_smem %s20_s15, 16, %s2053_s17, [#allocation6] }
  0x13   :  { %2042 = dma.done.wait [#allocation6], 32 }
  0x14   :  { %2043 = vsyncadd [#allocation6], 4294967264 }
  0x15   :  { %24 = sfence }
  0x16   :  { %25 = vsyncpa [#allocation10], 0 }
  0x17   :  { %26 = vsyncpa [#allocation13], 0 }
  0x18   :  { %27 = vsyncpa [#allocation16], 0 }
  0x19   :  { %28 = vsyncpa [#allocation11], 0  ;;  %s2054_s0 = smov [#allocation12]   ;;  %s2055_s1 = smov [#allocation15]  }
  0x1a   :  { %s48_s18 = sshll.u32 %s2054_s0, 4  ;;  %s74_s19 = sshll.u32 %s2055_s1, 4  ;;  %s49_s18 = int_to_ptr.vmem [resolvable:$true] %s48_s18  ;;  %s2148_s19 = int_to_ptr.vmem [resolvable:$true] %s74_s19 }
  0x1b   :  { %s1910_s22 = scalar_lea.hbm %s2482_s4, 512 }
  0x1c   :  { %p1911_p8 = scmp.ne.s32.totalorder %s2482_s4, %s1910_s22  ;;  %p1914_p9 = scmp.lt.u32.totalorder %s1910_s22, %s2482_s4 }
  0x1e   :  { %p1916_p10 = pnand %p1914_p9, %p1911_p8 }
  0x20   :  { %1919 = shalt.err (!%p1916_p10)
}
  0x21   :  { %s1920_s27 = scalar_lea.vmem %s49_s18, 512  ;;  %p1925_p12 = scmp.lt.s32.totalorder %s49_s18, %s49_s18 }
  0x22   :  { %p1921_p11 = scmp.ne.s32.totalorder %s49_s18, %s1920_s27  ;;  %p1926_p13 = scmp.lt.s32.totalorder %s1920_s27, %s1920_s27 }
  0x24   :  { %p1927_p0 = por %p1926_p13, %p1925_p12 }
  0x26   :  { %p1928_p1 = pnand %p1927_p0, %p1921_p11 }
  0x28   :  { %1931 = shalt.err (!%p1928_p1)
}
  0x29   :  { %s2056_s28 = smov 128   ;;  %s2057_s29 = smov 8  }
  0x2a   :  { %54 = dma.hbm_to_vmem [thread:$0]  %s2482_s4, 512, %s49_s18, [#allocation13], %s2056_s28, %s2056_s28, %s2057_s29  }
  0x2b   :  { %s1932_s16 = scalar_lea.hbm %s2485_s7, 512 }
  0x2c   :  { %p1933_p2 = scmp.ne.s32.totalorder %s2485_s7, %s1932_s16  ;;  %p1936_p3 = scmp.lt.u32.totalorder %s1932_s16, %s2485_s7 }
  0x2e   :  { %p1938_p4 = pnand %p1936_p3, %p1933_p2 }
  0x30   :  { %1941 = shalt.err (!%p1938_p4)
}
  0x31   :  { %s1942_s21 = scalar_lea.vmem %s2148_s19, 512  ;;  %p1947_p6 = scmp.lt.s32.totalorder %s2148_s19, %s2148_s19 }
  0x32   :  { %p1943_p5 = scmp.ne.s32.totalorder %s2148_s19, %s1942_s21  ;;  %p1948_p7 = scmp.lt.s32.totalorder %s1942_s21, %s1942_s21 }
  0x34   :  { %p1949_p8 = por %p1948_p7, %p1947_p6 }
  0x36   :  { %p1950_p9 = pnand %p1949_p8, %p1943_p5 }
  0x38   :  { %1953 = shalt.err (!%p1950_p9)
}
  0x39   :  { %80 = dma.hbm_to_vmem [thread:$0]  %s2485_s7, 512, %s2148_s19, [#allocation16], %s2056_s28, %s2056_s28, %s2057_s29  }
  0x3a   :  { %s2058_s22 = smov [#allocation9]   ;;  %s2059_s24 = smov [#allocation14]  }
  0x3b   :  { %s34_s23 = sshll.u32 %s2058_s22, 4  ;;  %s60_s25 = sshll.u32 %s2059_s24, 4  ;;  %s35_s23 = int_to_ptr.vmem [resolvable:$true] %s34_s23  ;;  %s2185_s25 = int_to_ptr.vmem [resolvable:$true] %s60_s25 }
  0x3c   :  { %s1954_s30 = scalar_lea.hbm %s2480_s2, 256 }
  0x3d   :  { %p1955_p10 = scmp.ne.s32.totalorder %s2480_s2, %s1954_s30  ;;  %p1958_p11 = scmp.lt.u32.totalorder %s1954_s30, %s2480_s2 }
  0x3f   :  { %p1960_p12 = pnand %p1958_p11, %p1955_p10 }
  0x41   :  { %1963 = shalt.err (!%p1960_p12)
}
  0x42   :  { %s1964_s7 = scalar_lea.vmem %s35_s23, 256  ;;  %p1969_p0 = scmp.lt.s32.totalorder %s35_s23, %s35_s23 }
  0x43   :  { %p1965_p13 = scmp.ne.s32.totalorder %s35_s23, %s1964_s7  ;;  %p1970_p1 = scmp.lt.s32.totalorder %s1964_s7, %s1964_s7 }
  0x45   :  { %p1971_p2 = por %p1970_p1, %p1969_p0 }
  0x47   :  { %p1972_p3 = pnand %p1971_p2, %p1965_p13 }
  0x49   :  { %1975 = shalt.err (!%p1972_p3)
}
  0x4a   :  { %40 = dma.hbm_to_vmem [thread:$0]  %s2480_s2, 256, %s35_s23, [#allocation10], %s2056_s28, %s2056_s28, %s2057_s29  }
  0x4b   :  { %s1976_s20 = scalar_lea.hbm %s2483_s5, 512 }
  0x4c   :  { %p1977_p4 = scmp.ne.s32.totalorder %s2483_s5, %s1976_s20  ;;  %p1980_p5 = scmp.lt.u32.totalorder %s1976_s20, %s2483_s5 }
  0x4e   :  { %p1982_p6 = pnand %p1980_p5, %p1977_p4 }
  0x50   :  { %1985 = shalt.err (!%p1982_p6)
}
  0x51   :  { %s1986_s24 = scalar_lea.vmem %s2185_s25, 512  ;;  %p1991_p8 = scmp.lt.s32.totalorder %s2185_s25, %s2185_s25 }
  0x52   :  { %p1987_p7 = scmp.ne.s32.totalorder %s2185_s25, %s1986_s24  ;;  %p1992_p9 = scmp.lt.s32.totalorder %s1986_s24, %s1986_s24 }
  0x54   :  { %p1993_p10 = por %p1992_p9, %p1991_p8 }
  0x56   :  { %p1994_p11 = pnand %p1993_p10, %p1987_p7 }
  0x58   :  { %1997 = shalt.err (!%p1994_p11)
}
  0x59   :  { %66 = dma.hbm_to_vmem [thread:$0]  %s2483_s5, 512, %s2185_s25, [#allocation13], %s2056_s28, %s2056_s28, %s2057_s29  }
  0x5a   :  { %s2060_s26 = smov [#allocation17]   ;;  %s1998_s14 = scalar_lea.hbm %s2486_s8, 512 }
  0x5b   :  { %s86_s27 = sshll.u32 %s2060_s26, 4  ;;  %p1999_p12 = scmp.ne.s32.totalorder %s2486_s8, %s1998_s14  ;;  %s87_s27 = int_to_ptr.vmem [resolvable:$true] %s86_s27 }
  0x5c   :  { %p2002_p13 = scmp.lt.u32.totalorder %s1998_s14, %s2486_s8 }
  0x5e   :  { %p2004_p0 = pnand %p2002_p13, %p1999_p12 }
  0x60   :  { %2007 = shalt.err (!%p2004_p0)
}
  0x61   :  { %s2008_s17 = scalar_lea.vmem %s87_s27, 512  ;;  %p2013_p2 = scmp.lt.s32.totalorder %s87_s27, %s87_s27 }
  0x62   :  { %p2009_p1 = scmp.ne.s32.totalorder %s87_s27, %s2008_s17  ;;  %p2014_p3 = scmp.lt.s32.totalorder %s2008_s17, %s2008_s17 }
  0x64   :  { %p2015_p4 = por %p2014_p3, %p2013_p2 }
  0x66   :  { %p2016_p5 = pnand %p2015_p4, %p2009_p1 }
  0x68   :  { %2019 = shalt.err (!%p2016_p5)
}
  0x69   :  { %92 = dma.hbm_to_vmem [thread:$0]  %s2486_s8, 512, %s87_s27, [#allocation16], %s2056_s28, %s2056_s28, %s2057_s29  }
  0x6a   :  { %2044 = dma.done.wait [#allocation10], 256  }
  0x6b   :  { %2045 = vsyncadd [#allocation10], 4294967040 }
  0x6c   :  { %2046 = dma.done.wait [#allocation13], 1024  }
  0x6d   :  { %2047 = vsyncadd [#allocation13], 4294966272 }
  0x6e   :  { %2048 = dma.done.wait [#allocation16], 1024  }
  0x6f   :  { %2049 = vsyncadd [#allocation16], 4294966272  ;;  %vm114_vm0 = vcmask 261120   ;;  %v2061_v0 = vmov 0.0|0.0   ;;  %vm2062_vm1 = vmmov 0   ;;  %v2063_v1 = vmov 0.0  }
  0x70   :  { %1722 = vmatprep.subr.bf16.mxu0 %v2061_v0  ;;  %1585 = vmatprep.mubr.msk.f32.mxu0 %vm2062_vm1, %v2063_v1  ;;  %115 = vst.msk [vmem:[#allocation2] sm:$0xff] %vm114_vm0, %v2063_v1  ;;  %116 = vst.msk [vmem:[#allocation2 + $0x8] sm:$0xff] %vm114_vm0, %v2063_v1  ;;  %vm121_vm2 = vcmask 254976   ;;  %v156_v2 = vld [vmem:[#allocation12] sm:$0xff]  ;;  %v157_v3 = vld [vmem:[#allocation12 + $0x8] sm:$0xff]  ;;  %s1458_s1 = sld [smem:[#allocation7 + $0x4]] }
  0x71   :  { %117 = vst.msk [vmem:[#allocation2 + $0x10] sm:$0xff] %vm114_vm0, %v2063_v1  ;;  %118 = vst.msk [vmem:[#allocation2 + $0x18] sm:$0xff] %vm114_vm0, %v2063_v1  ;;  %1752 = vmatprep.subr.bf16.mxu1 %v2061_v0  ;;  %1652 = vmatprep.mubr.msk.f32.mxu1 %vm2062_vm1, %v2063_v1  ;;  %v158_v4 = vld [vmem:[#allocation12 + $0x10] sm:$0xff]  ;;  %v1723_v5 = vpack.c.bf16 %v157_v3, %v156_v2  ;;  %v159_v6 = vld [vmem:[#allocation12 + $0x18] sm:$0xff]  ;;  %s1459_s20 = sld [smem:[#allocation7 + $0x1]]  ;;  %s1460_s21 = sld [smem:[#allocation7 + $0x5]] }
  0x72   :  { %119 = vst.msk [vmem:[#allocation2 + $0x20] sm:$0xff] %vm114_vm0, %v2063_v1  ;;  %1306 = vst.msk [vmem:[#allocation5] sm:$0xff] %vm114_vm0, %v2063_v1  ;;  %v120_v7 = vld [vmem:[%s2481_s3] sm:$0x3]  ;;  %v1726_v8 = vpack.c.bf16 %v159_v6, %v158_v4  ;;  %s2064_s3 = smov 64   ;;  %v160_v22 = vld [vmem:[#allocation14] sm:$0xff] }
  0x73   :  { %122 = vst.msk [vmem:[#allocation2] sm:$0x3] %vm121_vm2, %v120_v7  ;;  %1724 = vmatpush3.bf16.msra.mxu0 %v1723_v5  ;;  %v2266_v10 = vld [vmem:[%s2484_s6] ss:$0 sm:$0xff]  ;;  %v161_v23 = vld [vmem:[#allocation14 + $0x8] sm:$0xff]  ;;  %s123_s6 = sld [smem:[#allocation7]] }
  0x74   :  { %1725 = vmatprep.subr.bf16.mxu0 %v2061_v0  ;;  %v162_v24 = vld [vmem:[#allocation14 + $0x10] sm:$0xff]  ;;  %v2274_v25 = vpack.c.bf16 %v161_v23, %v160_v22  ;;  %v163_v26 = vld [vmem:[#allocation14 + $0x18] sm:$0xff]  ;;  %s1461_s4 = sld [smem:[#allocation7 + $0x2]]  ;;  %s1462_s18 = sld [smem:[#allocation7 + $0x6]]  ;;  %vm126_vm3 = vcmask 253952   ;;  %v731_v41 = vld [vmem:[#allocation15] sm:$0xff] }
  0x75   :  { %v2277_v27 = vpack.c.bf16 %v163_v26, %v162_v24  ;;  %s1463_s22 = sld [smem:[#allocation7 + $0x3]]  ;;  %s2280_s24 = sld [smem:[#allocation7 + $0x7]]  ;;  %v732_v42 = vld [vmem:[#allocation15 + $0x8] sm:$0xff]  ;;  %v733_v44 = vld [vmem:[#allocation15 + $0x10] sm:$0xff]  ;;  %v734_v45 = vld [vmem:[#allocation15 + $0x18] sm:$0xff] }
  0x76   :  { %s129_s23 = scalar_lea.vmem [#allocation9], %s1458_s1  ;;  %s2065_s13 = smov 96   ;;  %v1753_v43 = vpack.c.bf16 %v732_v42, %v731_v41  ;;  %v1756_v46 = vpack.c.bf16 %v734_v45, %v733_v44 }
  0x77   :  { %1727 = vmatpush3.bf16.msra.mxu0 %v1726_v8  ;;  %v130_v29 = vld [vmem:[%s129_s23] sm:$0x1]  ;;  %s133_s26 = scalar_lea.vmem [#allocation9], %s1459_s20  ;;  %s137_s27 = scalar_lea.vmem [#allocation9], %s1460_s21 }
  0x78   :  { %1728 = vmatprep.subr.bf16.mxu0 %v2061_v0  ;;  %v134_v30 = vld [vmem:[%s133_s26] sm:$0x1]  ;;  %131 = vst.msk [vmem:[#allocation2 + $0x9] sm:$0x1] %vm126_vm3, %v130_v29  ;;  %s2066_s7 = smov 32   ;;  %1754 = vmatpush3.bf16.msra.mxu1 %v1753_v43  ;;  %s1505_s1 = sld [smem:[#allocation8 + $0x1]] }
  0x79   :  { %s124_s2 = scalar_lea.vmem [#allocation9], %s123_s6  ;;  %135 = vst.msk [vmem:[#allocation2 + $0x10] sm:$0x1] %vm126_vm3, %v134_v30  ;;  %v138_v32 = vld [vmem:[%s137_s27] sm:$0x1]  ;;  %1755 = vmatprep.subr.bf16.mxu1 %v2061_v0  ;;  %s1506_s20 = sld [smem:[#allocation8 + $0x2]] }
  0x7a   :  { %v165_v9 = vld [vmem:[#allocation2] sm:$0xff]  ;;  %v125_v28 = vld [vmem:[%s124_s2] sm:$0x1]  ;;  %s141_s30 = scalar_lea.vmem [#allocation9], %s1461_s4  ;;  %139 = vst.msk [vmem:[#allocation2 + $0x11] sm:$0x1] %vm126_vm3, %v138_v32 }
  0x7b   :  { %1586 = vmatmul.mubr.msk.f32.vlgmr.msra.gmra.mrb[0].mxu0 %vm114_vm0, %v165_v9  ;;  %127 = vst.msk [vmem:[#allocation2 + $0x8] sm:$0x1] %vm126_vm3, %v125_v28  ;;  %v142_v33 = vld [vmem:[%s141_s30] sm:$0x1]  ;;  %s145_s14 = scalar_lea.vmem [#allocation9], %s1462_s18  ;;  %s149_s15 = scalar_lea.vmem [#allocation9], %s1463_s22 }
  0x7c   :  { %1588 = vmatprep.mubr.msk.f32.mxu0 %vm2062_vm1, %v2063_v1  ;;  %1730 = vmatpush3.bf16.msra.mxu0 %v2274_v25  ;;  %143 = vst.msk [vmem:[#allocation2 + $0x18] sm:$0x1] %vm126_vm3, %v142_v33  ;;  %v146_v34 = vld [vmem:[%s145_s14] sm:$0x1]  ;;  %s153_s16 = scalar_lea.vmem [#allocation9], %s2280_s24  ;;  %s1507_s21 = sld [smem:[#allocation8 + $0x3]] }
  0x7d   :  { %1731 = vmatprep.subr.bf16.mxu0 %v2061_v0  ;;  %v150_v35 = vld [vmem:[%s149_s15] sm:$0x1]  ;;  %147 = vst.msk [vmem:[#allocation2 + $0x19] sm:$0x1] %vm126_vm3, %v146_v34  ;;  %1757 = vmatpush3.bf16.msra.mxu1 %v1756_v46  ;;  %s1508_s4 = sld [smem:[#allocation8 + $0x4]]  ;;  %s1509_s18 = sld [smem:[#allocation8 + $0x5]] }
  0x7e   :  { %151 = vst.msk [vmem:[#allocation2 + $0x20] sm:$0x1] %vm126_vm3, %v150_v35  ;;  %v154_v36 = vld [vmem:[%s153_s16] sm:$0x1]  ;;  %1758 = vmatprep.subr.bf16.mxu1 %v2061_v0  ;;  %s1510_s22 = sld [smem:[#allocation8 + $0x6]]  ;;  %s1511_s24 = sld [smem:[#allocation8 + $0x7]] }
  0x7f   :  { %155 = vst.msk [vmem:[#allocation2 + $0x21] sm:$0x1] %vm126_vm3, %v154_v36  ;;  %s1312_s2 = scalar_lea.vmem [#allocation4], %s1505_s1  ;;  %s1316_s23 = scalar_lea.vmem [#allocation4], %s1506_s20 }
  0x80   :  { %1733 = vmatpush3.bf16.msra.mxu0 %v2277_v27 }
  0x81   :  { %1734 = vmatprep.subr.bf16.mxu0 %v2061_v0  ;;  %v167_v38 = vld [vmem:[#allocation2 + $0x10] sm:$0xff] }
  0x82   :  { %v166_v37 = vld [vmem:[#allocation2 + $0x8] sm:$0xff]  ;;  %s1320_s26 = scalar_lea.vmem [#allocation4], %s1507_s21 }
  0x83   :  { %1589 = vmatmul.mubr.msk.f32.gmra.mrb[2].mxu0 %vm114_vm0, %v166_v37  ;;  %s1324_s27 = scalar_lea.vmem [#allocation4], %s1508_s4  ;;  %s1328_s30 = scalar_lea.vmem [#allocation4], %s1509_s18 }
  0x84   :  { %1591 = vmatprep.mubr.msk.f32.mxu0 %vm2062_vm1, %v2063_v1  ;;  %v168_v39 = vld [vmem:[#allocation2 + $0x18] sm:$0xff]  ;;  %s1336_s14 = scalar_lea.vmem [#allocation4], %s1511_s24 }
  0x86   :  { %v169_v40 = vld [vmem:[#allocation2 + $0x20] sm:$0xff] }
  0x87   :  { %1592 = vmatmul.mubr.msk.f32.gmra.mrb[4].mxu0 %vm114_vm0, %v167_v38 }
  0x88   :  { %1594 = vmatprep.mubr.msk.f32.mxu0 %vm2062_vm1, %v2063_v1 }
  0x8b   :  { %1595 = vmatmul.mubr.msk.f32.gmra.mrb[6].mxu0 %vm114_vm0, %v168_v39 }
  0x8c   :  { %1597 = vmatprep.mubr.msk.f32.mxu0 %vm2062_vm1, %v2063_v1 }
  0x8f   :  { %1598 = vmatmul.mubr.msk.f32.gmra.mrb[8].mxu0 %vm114_vm0, %v169_v40 }
  0x90   :  { %1608 = vmatprep.mubr.msk.f32.mxu0 %vm2062_vm1, %v2063_v1 }
 0x14e   :  { %v257_v11 = vpop.f32.mrb[0].mxu0 }
 0x14f   :  { %v258_v12 = vadd.f32 %v2266_v10, %v257_v11  ;;  %v1587_v13 = vpop.f32.mrb[1].mxu0 }
 0x151   :  { %v1471_v14 = vmul.f32 -1.442695, %v258_v12 }
 0x153   :  { %1828 = vpow2.f32 %v1471_v14 }
 0x15d   :  { %v1829_v15 = vpop.eup %1828 }
 0x15e   :  { %v290_v16 = vadd.f32 1.0, %v1829_v15 }
 0x160   :  { %1830 = vrcp.f32 %v290_v16 }
 0x16a   :  { %v2269_v17 = vpop.eup %1830 }
 0x16b   :  { %v293_v18 = vmul.f32 2.0, %v2269_v17 }
 0x16d   :  { %v1472_v19 = vadd.f32 -1.0, %v293_v18 }
 0x16f   :  { %296 = vrot.lane.b32.xlu0 %v1472_v19, %s2064_s3 }
 0x1e1   :  { %v297_v20 = vpop.permute.xlu0 %296 }
 0x1e2   :  { %v299_v21 = vmul.f32 %v2269_v17, %v297_v20 }
 0x1e4   :  { %1832 = vtanh.f32 %v299_v21 }
 0x1ee   :  { %v1833_v31 = vpop.eup %1832 }
 0x1ef   :  { %302 = vrot.lane.b32.xlu0 %v1833_v31, %s2065_s13 }
 0x1f3   :  { %394 = vrot.lane.b32.xlu0 %v299_v21, %s2066_s7 }
 0x261   :  { %v303_v47 = vpop.permute.xlu0 %302 }
 0x262   :  { %v305_v48 = vmul.f32 %v2269_v17, %v303_v47 }
 0x264   :  { %307 = vrot.lane.b32.xlu1 %v305_v48, %s2066_s7 }
 0x265   :  { %v395_v2 = vpop.permute.xlu0 %394 }
 0x2d6   :  { %v308_v49 = vpop.permute.xlu1 %307 }
 0x2d7   :  { %310 = vst.msk [vmem:[#allocation4] sm:$0xff] %vm114_vm0, %v308_v49  ;;  %1609 = vmatmul.mubr.msk.f32.vlgmr.msra.gmra.mrb[2].mxu0 %vm114_vm0, %v308_v49 }
 0x2d8   :  { %1736 = vmatpush3.bf16.msra.mxu0 %v2274_v25  ;;  %1619 = vmatprep.mubr.msk.f32.mxu0 %vm2062_vm1, %v2063_v1 }
 0x2d9   :  { %1737 = vmatprep.subr.bf16.mxu0 %v2061_v0 }
 0x2dc   :  { %1739 = vmatpush3.bf16.msra.mxu0 %v2277_v27 }
 0x2dd   :  { %1740 = vmatprep.subr.bf16.mxu0 %v2061_v0 }
 0x2de   :  { %v740_v50 = vld [vmem:[#allocation4] sm:$0xff] }
 0x2df   :  { %1653 = vmatmul.mubr.msk.f32.vlgmr.msra.gmra.mrb[0].mxu1 %vm114_vm0, %v740_v50  ;;  %v2371_v50 = vld [vmem:[%s2487_s9] ss:$0 sm:$0xff] }
 0x2e0   :  { %1655 = vmatprep.mubr.msk.f32.mxu1 %vm2062_vm1, %v2063_v1 }
 0x3aa   :  { %v380_v51 = vpop.f32.mrb[2].mxu0 }
 0x3ab   :  { %v1788_v52 = vadd.f32 %v2266_v10, %v380_v51  ;;  %v1610_v53 = vpop.f32.mrb[3].mxu0 }
 0x3ad   :  { %v1474_v54 = vmul.f32 -1.442695, %v1788_v52 }
 0x3af   :  { %1834 = vpow2.f32 %v1474_v54 }
 0x3b2   :  { %v2323_v55 = vpop.f32.mrb[0].mxu1 }
 0x3b3   :  { %v1654_v56 = vpop.f32.mrb[1].mxu1  ;;  %v833_v51 = vadd.f32 %v2371_v50, %v2323_v55 }
 0x3b5   :  { %v1491_v52 = vmul.f32 -1.442695, %v833_v51 }
 0x3b9   :  { %v1835_v57 = vpop.eup %1834 }
 0x3ba   :  { %v388_v58 = vadd.f32 1.0, %v1835_v57 }
 0x3bc   :  { %1836 = vrcp.f32 %v388_v58 }
 0x3c6   :  { %v1837_v59 = vpop.eup %1836 }
 0x3c7   :  { %v391_v60 = vmul.f32 2.0, %v1837_v59  ;;  %v397_v3 = vmul.f32 %v1837_v59, %v395_v2 }
 0x3c9   :  { %v1475_v61 = vadd.f32 -1.0, %v391_v60 }
 0x3cb   :  { %399 = vrot.lane.b32.xlu1 %v1475_v61, %s2064_s3 }
 0x43d   :  { %v400_v62 = vpop.permute.xlu1 %399 }
 0x43e   :  { %v402_v63 = vmul.f32 %v1837_v59, %v400_v62 }
 0x440   :  { %404 = vrot.lane.b32.xlu1 %v402_v63, %s2066_s7 }
 0x4b2   :  { %v405_v4 = vpop.permute.xlu1 %404 }
 0x4b3   :  { %v407_v5 = vadd.f32 %v405_v4, %v397_v3 }
 0x4b5   :  { %1838 = vtanh.f32 %v407_v5 }
 0x4bf   :  { %v1839_v6 = vpop.eup %1838 }
 0x4c0   :  { %410 = vrot.lane.b32.xlu0 %v1839_v6, %s2064_s3 }
 0x532   :  { %v411_v7 = vpop.permute.xlu0 %410 }
 0x533   :  { %v413_v8 = vmul.f32 %v1837_v59, %v411_v7 }
 0x535   :  { %415 = vrot.lane.b32.xlu1 %v413_v8, %s2066_s7 }
 0x5a7   :  { %v416_v9 = vpop.permute.xlu1 %415 }
 0x5a8   :  { %418 = vst.msk [vmem:[#allocation4 + $0x8] sm:$0xff] %vm114_vm0, %v416_v9  ;;  %1620 = vmatmul.mubr.msk.f32.vlgmr.msra.gmra.mrb[4].mxu0 %vm114_vm0, %v416_v9 }
 0x5a9   :  { %1742 = vmatpush3.bf16.msra.mxu0 %v2274_v25  ;;  %1630 = vmatprep.mubr.msk.f32.mxu0 %vm2062_vm1, %v2063_v1 }
 0x5aa   :  { %1743 = vmatprep.subr.bf16.mxu0 %v2061_v0 }
 0x5ad   :  { %1745 = vmatpush3.bf16.msra.mxu0 %v2277_v27 }
 0x5ae   :  { %1746 = vmatprep.subr.bf16.mxu0 %v2061_v0 }
 0x5af   :  { %v741_v11 = vld [vmem:[#allocation4 + $0x8] sm:$0xff] }
 0x5b0   :  { %1656 = vmatmul.mubr.msk.f32.gmra.mrb[2].mxu1 %vm114_vm0, %v741_v11 }
 0x5b1   :  { %1658 = vmatprep.mubr.msk.f32.mxu1 %vm2062_vm1, %v2063_v1 }
 0x67b   :  { %v488_v12 = vpop.f32.mrb[4].mxu0 }
 0x67c   :  { %v1789_v13 = vadd.f32 %v2266_v10, %v488_v12  ;;  %v1621_v14 = vpop.f32.mrb[5].mxu0 }
 0x67d   :  { %v736_v14 = vld [vmem:[#allocation17 + $0x8] sm:$0xff] }
 0x67e   :  { %v1477_v15 = vmul.f32 -1.442695, %v1789_v13  ;;  %v735_v13 = vld [vmem:[#allocation17] sm:$0xff] }
 0x680   :  { %1840 = vpow2.f32 %v1477_v15  ;;  %v2380_v15 = vpack.c.bf16 %v736_v14, %v735_v13 }
 0x682   :  { %1760 = vmatpush3.bf16.msra.mxu1 %v2380_v15 }
 0x683   :  { %1761 = vmatprep.subr.bf16.mxu1 %v2061_v0 }
 0x68a   :  { %v1841_v16 = vpop.eup %1840 }
 0x68b   :  { %v496_v17 = vadd.f32 1.0, %v1841_v16 }
 0x68d   :  { %1842 = vrcp.f32 %v496_v17 }
 0x697   :  { %v1843_v18 = vpop.eup %1842 }
 0x698   :  { %v499_v19 = vmul.f32 2.0, %v1843_v18  ;;  %v501_v23 = vmul.f32 %v1843_v18, %v407_v5 }
 0x69a   :  { %v1478_v20 = vadd.f32 -1.0, %v499_v19  ;;  %v737_v19 = vld [vmem:[#allocation17 + $0x10] sm:$0xff] }
 0x69c   :  { %503 = vrot.lane.b32.xlu0 %v1478_v20, %s2064_s3  ;;  %v738_v20 = vld [vmem:[#allocation17 + $0x18] sm:$0xff] }
 0x70e   :  { %v504_v21 = vpop.permute.xlu0 %503 }
 0x70f   :  { %v506_v22 = vmul.f32 %v1843_v18, %v504_v21  ;;  %v2387_v21 = vpack.c.bf16 %v738_v20, %v737_v19 }
 0x711   :  { %508 = vrot.lane.b32.xlu1 %v506_v22, %s2066_s7  ;;  %1763 = vmatpush3.bf16.msra.mxu1 %v2387_v21 }
 0x712   :  { %1764 = vmatprep.subr.bf16.mxu1 %v2061_v0 }
 0x783   :  { %v509_v24 = vpop.permute.xlu1 %508 }
 0x784   :  { %v511_v26 = vadd.f32 %v509_v24, %v501_v23 }
 0x786   :  { %1844 = vtanh.f32 %v511_v26 }
 0x790   :  { %v1845_v28 = vpop.eup %1844 }
 0x791   :  { %514 = vrot.lane.b32.xlu0 %v1845_v28, %s2064_s3 }
 0x803   :  { %v515_v29 = vpop.permute.xlu0 %514 }
 0x804   :  { %v517_v30 = vmul.f32 %v1843_v18, %v515_v29 }
 0x806   :  { %519 = vrot.lane.b32.xlu1 %v517_v30, %s2066_s7 }
 0x878   :  { %v520_v31 = vpop.permute.xlu1 %519 }
 0x879   :  { %522 = vst.msk [vmem:[#allocation4 + $0x10] sm:$0xff] %vm114_vm0, %v520_v31  ;;  %1631 = vmatmul.mubr.msk.f32.vlgmr.msra.gmra.mrb[6].mxu0 %vm114_vm0, %v520_v31 }
 0x87a   :  { %1748 = vmatpush3.bf16.msra.mxu0 %v2274_v25  ;;  %1641 = vmatprep.mubr.msk.f32.mxu0 %vm2062_vm1, %v2063_v1 }
 0x87b   :  { %1749 = vmatprep.subr.bf16.mxu0 %v2061_v0 }
 0x87e   :  { %1751 = vmatpush3.bf16.msra.mxu0 %v2277_v27 }
 0x87f   :  { %1782 = vmatprep.subr.bf16.mxu0 %v2061_v0 }
 0x880   :  { %v742_v32 = vld [vmem:[#allocation4 + $0x10] sm:$0xff] }
 0x881   :  { %1659 = vmatmul.mubr.msk.f32.gmra.mrb[4].mxu1 %vm114_vm0, %v742_v32 }
 0x882   :  { %1661 = vmatprep.mubr.msk.f32.mxu1 %vm2062_vm1, %v2063_v1 }
 0x94c   :  { %v592_v33 = vpop.f32.mrb[6].mxu0 }
 0x94d   :  { %v1790_v34 = vadd.f32 %v2266_v10, %v592_v33  ;;  %v1632_v35 = vpop.f32.mrb[7].mxu0 }
 0x94f   :  { %v1480_v25 = vmul.f32 -1.442695, %v1790_v34 }
 0x951   :  { %1846 = vpow2.f32 %v1480_v25 }
 0x95b   :  { %v1847_v36 = vpop.eup %1846 }
 0x95c   :  { %v600_v37 = vadd.f32 1.0, %v1847_v36 }
 0x95e   :  { %1848 = vrcp.f32 %v600_v37 }
 0x968   :  { %v1849_v38 = vpop.eup %1848 }
 0x969   :  { %v603_v39 = vmul.f32 2.0, %v1849_v38  ;;  %v605_v42 = vmul.f32 %v1849_v38, %v511_v26 }
 0x96b   :  { %v1481_v27 = vadd.f32 -1.0, %v603_v39 }
 0x96d   :  { %607 = vrot.lane.b32.xlu0 %v1481_v27, %s2064_s3 }
 0x9df   :  { %v608_v40 = vpop.permute.xlu0 %607 }
 0x9e0   :  { %v610_v41 = vmul.f32 %v1849_v38, %v608_v40 }
 0x9e2   :  { %612 = vrot.lane.b32.xlu1 %v610_v41, %s2066_s7 }
 0xa54   :  { %v613_v43 = vpop.permute.xlu1 %612 }
 0xa55   :  { %v615_v44 = vadd.f32 %v613_v43, %v605_v42 }
 0xa57   :  { %1850 = vtanh.f32 %v615_v44 }
 0xa58   :  { %1852 = vpow2.f32 %v1491_v52 }
 0xa61   :  { %v1851_v45 = vpop.eup %1850 }
 0xa62   :  { %618 = vrot.lane.b32.xlu0 %v1851_v45, %s2064_s3  ;;  %v1853_v58 = vpop.eup %1852 }
 0xa63   :  { %v865_v59 = vadd.f32 1.0, %v1853_v58 }
 0xad4   :  { %v619_v46 = vpop.permute.xlu0 %618 }
 0xad5   :  { %v621_v47 = vmul.f32 %v1849_v38, %v619_v46 }
 0xad7   :  { %623 = vrot.lane.b32.xlu1 %v621_v47, %s2066_s7 }
 0xb49   :  { %v624_v48 = vpop.permute.xlu1 %623 }
 0xb4a   :  { %626 = vst.msk [vmem:[#allocation4 + $0x18] sm:$0xff] %vm114_vm0, %v624_v48  ;;  %1642 = vmatmul.mubr.msk.f32.vlgmr.msra.gmra.mrb[8].mxu0 %vm114_vm0, %v624_v48 }
 0xb4b   :  { %1719 = vmatprep.mubr.msk.f32.mxu0 %vm2062_vm1, %v2063_v1 }
 0xb51   :  { %v743_v49 = vld [vmem:[#allocation4 + $0x18] sm:$0xff] }
 0xb52   :  { %1662 = vmatmul.mubr.msk.f32.gmra.mrb[6].mxu1 %vm114_vm0, %v743_v49 }
 0xb53   :  { %1664 = vmatprep.mubr.msk.f32.mxu1 %vm2062_vm1, %v2063_v1 }
 0xc1d   :  { %v696_v53 = vpop.f32.mrb[8].mxu0 }
 0xc1e   :  { %v1791_v54 = vadd.f32 %v2266_v10, %v696_v53  ;;  %v1643_v56 = vpop.f32.mrb[9].mxu0 }
 0xc20   :  { %v1483_v57 = vmul.f32 -1.442695, %v1791_v54 }
 0xc22   :  { %1854 = vpow2.f32 %v1483_v57 }
 0xc23   :  { %1856 = vrcp.f32 %v865_v59 }
 0xc2c   :  { %v1855_v60 = vpop.eup %1854 }
 0xc2d   :  { %v704_v61 = vadd.f32 1.0, %v1855_v60  ;;  %v1857_v62 = vpop.eup %1856 }
 0xc2e   :  { %v868_v4 = vmul.f32 2.0, %v1857_v62 }
 0xc2f   :  { %1858 = vrcp.f32 %v704_v61 }
 0xc30   :  { %v1492_v55 = vadd.f32 -1.0, %v868_v4 }
 0xc39   :  { %v1859_v63 = vpop.eup %1858 }
 0xc3a   :  { %v707_v2 = vmul.f32 2.0, %v1859_v63  ;;  %v709_v9 = vmul.f32 %v1859_v63, %v615_v44 }
 0xc3c   :  { %v1484_v3 = vadd.f32 -1.0, %v707_v2 }
 0xc3e   :  { %711 = vrot.lane.b32.xlu0 %v1484_v3, %s2064_s3 }
 0xc42   :  { %871 = vrot.lane.b32.xlu0 %v1492_v55, %s2064_s3 }
 0xcb0   :  { %v712_v10 = vpop.permute.xlu0 %711 }
 0xcb1   :  { %v714_v5 = vmul.f32 %v1859_v63, %v712_v10 }
 0xcb3   :  { %716 = vrot.lane.b32.xlu1 %v714_v5, %s2066_s7 }
 0xcb4   :  { %v872_v6 = vpop.permute.xlu0 %871 }
 0xcb5   :  { %v874_v7 = vmul.f32 %v1857_v62, %v872_v6 }
 0xcb7   :  { %1860 = vtanh.f32 %v874_v7 }
 0xcc1   :  { %v1861_v8 = vpop.eup %1860 }
 0xcc2   :  { %877 = vrot.lane.b32.xlu0 %v1861_v8, %s2065_s13  ;;  %s1332_s13 = scalar_lea.vmem [#allocation4], %s1510_s22 }
 0xd25   :  { %v717_v11 = vpop.permute.xlu1 %716 }
 0xd26   :  { %v719_v12 = vadd.f32 %v717_v11, %v709_v9 }
 0xd28   :  { %1862 = vtanh.f32 %v719_v12 }
 0xd32   :  { %v1863_v16 = vpop.eup %1862 }
 0xd33   :  { %722 = vrot.lane.b32.xlu1 %v1863_v16, %s2064_s3 }
 0xd34   :  { %v878_v17 = vpop.permute.xlu0 %877 }
 0xd35   :  { %v880_v18 = vmul.f32 %v1857_v62, %v878_v17 }
 0xd37   :  { %882 = vrot.lane.b32.xlu0 %v880_v18, %s2066_s7 }
 0xd3b   :  { %969 = vrot.lane.b32.xlu0 %v874_v7, %s2066_s7 }
 0xda5   :  { %v723_v22 = vpop.permute.xlu1 %722 }
 0xda6   :  { %v725_v23 = vmul.f32 %v1859_v63, %v723_v22 }
 0xda8   :  { %727 = vrot.lane.b32.xlu1 %v725_v23, %s2066_s7 }
 0xda9   :  { %v883_v24 = vpop.permute.xlu0 %882 }
 0xdaa   :  { %885 = vst.msk [vmem:[#allocation4] sm:$0xff] %vm114_vm0, %v883_v24 }
 0xdad   :  { %v970_v39 = vpop.permute.xlu0 %969 }
 0xe1a   :  { %v728_v26 = vpop.permute.xlu1 %727 }
 0xe1b   :  { %730 = vst.msk [vmem:[#allocation4 + $0x20] sm:$0xff] %vm114_vm0, %v728_v26 }
 0xe22   :  { %v744_v28 = vld [vmem:[#allocation4 + $0x20] sm:$0xff] }
 0xe23   :  { %1665 = vmatmul.mubr.msk.f32.gmra.mrb[8].mxu1 %vm114_vm0, %v744_v28 }
 0xe24   :  { %1675 = vmatprep.mubr.msk.f32.mxu1 %vm2062_vm1, %v2063_v1 }
 0xe27   :  { %1676 = vmatmul.mubr.msk.f32.vlgmr.msra.gmra.mrb[2].mxu1 %vm114_vm0, %v883_v24 }
 0xe28   :  { %1766 = vmatpush3.bf16.msra.mxu1 %v2380_v15  ;;  %1686 = vmatprep.mubr.msk.f32.mxu1 %vm2062_vm1, %v2063_v1 }
 0xe29   :  { %1767 = vmatprep.subr.bf16.mxu1 %v2061_v0 }
 0xe2c   :  { %1769 = vmatpush3.bf16.msra.mxu1 %v2387_v21 }
 0xe2d   :  { %1770 = vmatprep.subr.bf16.mxu1 %v2061_v0 }
 0xefa   :  { %v955_v29 = vpop.f32.mrb[2].mxu1 }
 0xefb   :  { %v1792_v30 = vadd.f32 %v2371_v50, %v955_v29  ;;  %v1677_v31 = vpop.f32.mrb[3].mxu1 }
 0xefd   :  { %v1494_v32 = vmul.f32 -1.442695, %v1792_v30 }
 0xeff   :  { %1864 = vpow2.f32 %v1494_v32 }
 0xf09   :  { %v1865_v33 = vpop.eup %1864 }
 0xf0a   :  { %v963_v34 = vadd.f32 1.0, %v1865_v33 }
 0xf0c   :  { %1866 = vrcp.f32 %v963_v34 }
 0xf16   :  { %v1867_v35 = vpop.eup %1866 }
 0xf17   :  { %v966_v25 = vmul.f32 2.0, %v1867_v35  ;;  %v972_v27 = vmul.f32 %v1867_v35, %v970_v39  ;;  %v1342_v39 = vld [vmem:[%s2488_s10 + $0x10] sm:$0xff] }
 0xf19   :  { %v1495_v36 = vadd.f32 -1.0, %v966_v25  ;;  %v1340_v25 = vld [vmem:[%s2488_s10] sm:$0xff] }
 0xf1b   :  { %974 = vrot.lane.b32.xlu1 %v1495_v36, %s2064_s3  ;;  %v1341_v36 = vld [vmem:[%s2488_s10 + $0x8] sm:$0xff] }
 0xf8d   :  { %v975_v37 = vpop.permute.xlu1 %974 }
 0xf8e   :  { %v977_v38 = vmul.f32 %v1867_v35, %v975_v37  ;;  %v1783_v37 = vpack.c.bf16 %v1341_v36, %v1340_v25 }
 0xf90   :  { %979 = vrot.lane.b32.xlu1 %v977_v38, %s2066_s7  ;;  %1784 = vmatpush3.bf16.msra.mxu0 %v1783_v37 }
 0xf91   :  { %1785 = vmatprep.subr.bf16.mxu0 %v2061_v0 }
0x1002   :  { %v980_v40 = vpop.permute.xlu1 %979 }
0x1003   :  { %v982_v41 = vadd.f32 %v980_v40, %v972_v27  ;;  %v1343_v27 = vld [vmem:[%s2488_s10 + $0x18] sm:$0xff] }
0x1005   :  { %1868 = vtanh.f32 %v982_v41 }
0x100f   :  { %v1869_v42 = vpop.eup %1868 }
0x1010   :  { %985 = vrot.lane.b32.xlu0 %v1869_v42, %s2064_s3 }
0x1082   :  { %v986_v43 = vpop.permute.xlu0 %985 }
0x1083   :  { %v988_v44 = vmul.f32 %v1867_v35, %v986_v43 }
0x1085   :  { %990 = vrot.lane.b32.xlu1 %v988_v44, %s2066_s7 }
0x10f7   :  { %v991_v45 = vpop.permute.xlu1 %990 }
0x10f8   :  { %993 = vst.msk [vmem:[#allocation4 + $0x8] sm:$0xff] %vm114_vm0, %v991_v45  ;;  %1687 = vmatmul.mubr.msk.f32.vlgmr.msra.gmra.mrb[4].mxu1 %vm114_vm0, %v991_v45 }
0x10f9   :  { %1772 = vmatpush3.bf16.msra.mxu1 %v2380_v15  ;;  %1697 = vmatprep.mubr.msk.f32.mxu1 %vm2062_vm1, %v2063_v1 }
0x10fa   :  { %1773 = vmatprep.subr.bf16.mxu1 %v2061_v0 }
0x10fd   :  { %1775 = vmatpush3.bf16.msra.mxu1 %v2387_v21 }
0x10fe   :  { %1776 = vmatprep.subr.bf16.mxu1 %v2061_v0 }
0x11cb   :  { %v1063_v46 = vpop.f32.mrb[4].mxu1 }
0x11cc   :  { %v1793_v47 = vadd.f32 %v2371_v50, %v1063_v46  ;;  %v1688_v48 = vpop.f32.mrb[5].mxu1 }
0x11ce   :  { %v1497_v49 = vmul.f32 -1.442695, %v1793_v47 }
0x11d0   :  { %1870 = vpow2.f32 %v1497_v49 }
0x11da   :  { %v1871_v51 = vpop.eup %1870 }
0x11db   :  { %v1071_v52 = vadd.f32 1.0, %v1871_v51 }
0x11dd   :  { %1872 = vrcp.f32 %v1071_v52  ;;  %v1512_v52 = vld [vmem:[%s2489_s11] ss:$0 sm:$0xff] }
0x11e7   :  { %v1873_v53 = vpop.eup %1872 }
0x11e8   :  { %v1074_v54 = vmul.f32 2.0, %v1873_v53  ;;  %v1076_v59 = vmul.f32 %v1873_v53, %v982_v41  ;;  %v1786_v41 = vpack.c.bf16 %v1343_v27, %v1342_v39 }
0x11ea   :  { %v1498_v56 = vadd.f32 -1.0, %v1074_v54  ;;  %1787 = vmatpush3.bf16.msra.mxu0 %v1786_v41 }
0x11ec   :  { %1078 = vrot.lane.b32.xlu0 %v1498_v56, %s2064_s3 }
0x125e   :  { %v1079_v57 = vpop.permute.xlu0 %1078 }
0x125f   :  { %v1081_v58 = vmul.f32 %v1873_v53, %v1079_v57 }
0x1261   :  { %1083 = vrot.lane.b32.xlu1 %v1081_v58, %s2066_s7 }
0x12d3   :  { %v1084_v60 = vpop.permute.xlu1 %1083 }
0x12d4   :  { %v1086_v61 = vadd.f32 %v1084_v60, %v1076_v59 }
0x12d6   :  { %1874 = vtanh.f32 %v1086_v61 }
0x12e0   :  { %v1875_v62 = vpop.eup %1874 }
0x12e1   :  { %1089 = vrot.lane.b32.xlu0 %v1875_v62, %s2064_s3 }
0x1353   :  { %v1090_v63 = vpop.permute.xlu0 %1089 }
0x1354   :  { %v1092_v2 = vmul.f32 %v1873_v53, %v1090_v63 }
0x1356   :  { %1094 = vrot.lane.b32.xlu1 %v1092_v2, %s2066_s7 }
0x13c8   :  { %v1095_v3 = vpop.permute.xlu1 %1094 }
0x13c9   :  { %1097 = vst.msk [vmem:[#allocation4 + $0x10] sm:$0xff] %vm114_vm0, %v1095_v3  ;;  %1698 = vmatmul.mubr.msk.f32.vlgmr.msra.gmra.mrb[6].mxu1 %vm114_vm0, %v1095_v3 }
0x13ca   :  { %1778 = vmatpush3.bf16.msra.mxu1 %v2380_v15  ;;  %1708 = vmatprep.mubr.msk.f32.mxu1 %vm2062_vm1, %v2063_v1 }
0x13cb   :  { %1779 = vmatprep.subr.bf16.mxu1 %v2061_v0 }
0x13ce   :  { %1781 = vmatpush3.bf16.msra.mxu1 %v2387_v21 }
0x149c   :  { %v1167_v4 = vpop.f32.mrb[6].mxu1 }
0x149d   :  { %v1794_v55 = vadd.f32 %v2371_v50, %v1167_v4  ;;  %v1699_v10 = vpop.f32.mrb[7].mxu1 }
0x149f   :  { %v1500_v5 = vmul.f32 -1.442695, %v1794_v55 }
0x14a1   :  { %1876 = vpow2.f32 %v1500_v5 }
0x14ab   :  { %v1877_v6 = vpop.eup %1876 }
0x14ac   :  { %v1175_v7 = vadd.f32 1.0, %v1877_v6 }
0x14ae   :  { %1878 = vrcp.f32 %v1175_v7 }
0x14b8   :  { %v1879_v8 = vpop.eup %1878 }
0x14b9   :  { %v1178_v9 = vmul.f32 2.0, %v1879_v8  ;;  %v1180_v13 = vmul.f32 %v1879_v8, %v1086_v61 }
0x14bb   :  { %v1501_v11 = vadd.f32 -1.0, %v1178_v9 }
0x14bd   :  { %1182 = vrot.lane.b32.xlu0 %v1501_v11, %s2064_s3 }
0x152f   :  { %v1183_v12 = vpop.permute.xlu0 %1182 }
0x1530   :  { %v1185_v1 = vmul.f32 %v1879_v8, %v1183_v12 }
0x1532   :  { %1187 = vrot.lane.b32.xlu1 %v1185_v1, %s2066_s7 }
0x15a4   :  { %v1188_v14 = vpop.permute.xlu1 %1187 }
0x15a5   :  { %v1190_v15 = vadd.f32 %v1188_v14, %v1180_v13 }
0x15a7   :  { %1880 = vtanh.f32 %v1190_v15 }
0x15b1   :  { %v1881_v16 = vpop.eup %1880 }
0x15b2   :  { %1193 = vrot.lane.b32.xlu0 %v1881_v16, %s2064_s3 }
0x1624   :  { %v1194_v17 = vpop.permute.xlu0 %1193 }
0x1625   :  { %v1196_v18 = vmul.f32 %v1879_v8, %v1194_v17 }
0x1627   :  { %1198 = vrot.lane.b32.xlu1 %v1196_v18, %s2066_s7 }
0x1699   :  { %v1199_v19 = vpop.permute.xlu1 %1198 }
0x169a   :  { %1201 = vst.msk [vmem:[#allocation4 + $0x18] sm:$0xff] %vm114_vm0, %v1199_v19  ;;  %1709 = vmatmul.mubr.msk.f32.vlgmr.msra.gmra.mrb[8].mxu1 %vm114_vm0, %v1199_v19 }
0x176d   :  { %v1271_v20 = vpop.f32.mrb[8].mxu1 }
0x176e   :  { %v1795_v21 = vadd.f32 %v2371_v50, %v1271_v20  ;;  %v1710_v22 = vpop.f32.mrb[9].mxu1 }
0x1770   :  { %v1503_v23 = vmul.f32 -1.442695, %v1795_v21 }
0x1772   :  { %1882 = vpow2.f32 %v1503_v23 }
0x177c   :  { %v1883_v24 = vpop.eup %1882 }
0x177d   :  { %v1279_v26 = vadd.f32 1.0, %v1883_v24 }
0x177f   :  { %1884 = vrcp.f32 %v1279_v26 }
0x1789   :  { %v1885_v28 = vpop.eup %1884 }
0x178a   :  { %v1282_v29 = vmul.f32 2.0, %v1885_v28  ;;  %v1284_v33 = vmul.f32 %v1885_v28, %v1190_v15 }
0x178c   :  { %v1504_v30 = vadd.f32 -1.0, %v1282_v29 }
0x178e   :  { %1286 = vrot.lane.b32.xlu0 %v1504_v30, %s2064_s3 }
0x1800   :  { %v1287_v31 = vpop.permute.xlu0 %1286 }
0x1801   :  { %v1289_v32 = vmul.f32 %v1885_v28, %v1287_v31 }
0x1803   :  { %1291 = vrot.lane.b32.xlu1 %v1289_v32, %s2066_s7 }
0x1875   :  { %v1292_v34 = vpop.permute.xlu1 %1291 }
0x1876   :  { %v1294_v35 = vadd.f32 %v1292_v34, %v1284_v33 }
0x1878   :  { %1886 = vtanh.f32 %v1294_v35 }
0x1882   :  { %v1887_v50 = vpop.eup %1886 }
0x1883   :  { %1297 = vrot.lane.b32.xlu0 %v1887_v50, %s2064_s3  ;;  %s1307_s3 = sld [smem:[#allocation8]] }
0x1889   :  { %s1308_s10 = scalar_lea.vmem [#allocation4], %s1307_s3 }
0x18f5   :  { %v1298_v38 = vpop.permute.xlu0 %1297 }
0x18f6   :  { %v1300_v40 = vmul.f32 %v1885_v28, %v1298_v38 }
0x18f8   :  { %1302 = vrot.lane.b32.xlu1 %v1300_v40, %s2066_s7  ;;  %s2067_s7 = smov [#allocation18]  }
0x18f9   :  { %s1431_s19 = sshll.u32 %s2067_s7, 4  ;;  %s1432_s19 = int_to_ptr.vmem [resolvable:$true] %s1431_s19 }
0x18fa   :  { %s2020_s17 = scalar_lea.vmem %s1432_s19, 128  ;;  %p2025_p7 = scmp.lt.s32.totalorder %s1432_s19, %s1432_s19 }
0x18fb   :  { %p2021_p6 = scmp.ne.s32.totalorder %s1432_s19, %s2020_s17  ;;  %p2026_p8 = scmp.lt.s32.totalorder %s2020_s17, %s2020_s17 }
0x18fd   :  { %p2027_p9 = por %p2026_p8, %p2025_p7 }
0x18ff   :  { %p2028_p10 = pnand %p2027_p9, %p2021_p6 }
0x196a   :  { %v1303_v42 = vpop.permute.xlu1 %1302 }
0x196b   :  { %1305 = vst.msk [vmem:[#allocation4 + $0x20] sm:$0xff] %vm114_vm0, %v1303_v42 }
0x1972   :  { %v1309_v43 = vld [vmem:[%s1308_s10] sm:$0x1] }
0x1973   :  { %v1313_v44 = vld [vmem:[%s1312_s2] sm:$0x1]  ;;  %1310 = vst.msk [vmem:[#allocation5] sm:$0x1] %vm126_vm3, %v1309_v43 }
0x1974   :  { %v1317_v0 = vld [vmem:[%s1316_s23] sm:$0x1]  ;;  %1314 = vst.msk [vmem:[#allocation5 + $0x1] sm:$0x1] %vm126_vm3, %v1313_v44 }
0x1975   :  { %v1321_v45 = vld [vmem:[%s1320_s26] sm:$0x1]  ;;  %1318 = vst.msk [vmem:[#allocation5 + $0x2] sm:$0x1] %vm126_vm3, %v1317_v0 }
0x1976   :  { %v1325_v46 = vld [vmem:[%s1324_s27] sm:$0x1]  ;;  %1322 = vst.msk [vmem:[#allocation5 + $0x3] sm:$0x1] %vm126_vm3, %v1321_v45 }
0x1977   :  { %v1329_v47 = vld [vmem:[%s1328_s30] sm:$0x1]  ;;  %1326 = vst.msk [vmem:[#allocation5 + $0x4] sm:$0x1] %vm126_vm3, %v1325_v46 }
0x1978   :  { %v1333_v48 = vld [vmem:[%s1332_s13] sm:$0x1]  ;;  %1330 = vst.msk [vmem:[#allocation5 + $0x5] sm:$0x1] %vm126_vm3, %v1329_v47 }
0x1979   :  { %v1337_v49 = vld [vmem:[%s1336_s14] sm:$0x1]  ;;  %1334 = vst.msk [vmem:[#allocation5 + $0x6] sm:$0x1] %vm126_vm3, %v1333_v48 }
0x197a   :  { %1338 = vst.msk [vmem:[#allocation5 + $0x7] sm:$0x1] %vm126_vm3, %v1337_v49 }
0x1981   :  { %v1339_v51 = vld [vmem:[#allocation5] sm:$0xff] }
0x1982   :  { %1720 = vmatmul.mubr.msk.f32.vlgmr.msra.gmra.mrb[10].mxu0 %vm114_vm0, %v1339_v51 }
0x1a55   :  { %v1420_v53 = vpop.f32.mrb[10].mxu0 }
0x1a56   :  { %v1421_v54 = vadd.f32 %v1512_v52, %v1420_v53  ;;  %v1721_v56 = vpop.f32.mrb[11].mxu0 }
0x1a58   :  { %1424 = vst [vmem:[#allocation18] sm:$0xff] %v1421_v54 }
0x1a59   :  { %2031 = shalt.err (!%p2028_p10)
}
0x1a5a   :  { %s2032_s25 = scalar_lea.hbm %s2490_s12, 128 }
0x1a5b   :  { %p2033_p11 = scmp.ne.s32.totalorder %s2490_s12, %s2032_s25  ;;  %p2036_p12 = scmp.lt.u32.totalorder %s2032_s25, %s2490_s12 }
0x1a5d   :  { %p2038_p13 = pnand %p2036_p12, %p2033_p11 }
0x1a5f   :  { %2041 = shalt.err (!%p2038_p13)
}
0x1a60   :  { %1434 = dma.vmem_to_hbm [thread:$0]  %s1432_s19, 128, %s2490_s12, [#allocation11]  }
0x1a61   :  { %2050 = dma.done.wait [#allocation11], 128  }
0x1a62   :  { %2051 = vsyncadd [#allocation11], 4294967168 }
0x1a63   :  { %1438 = vsyncpa [#allocation10], 1 }
0x1a64   :  { %1439 = vsyncpa [#allocation13], 1 }
0x1a65   :  { %1440 = vsyncpa [#allocation16], 1 }
0x1a66   :  { %1441 = vsyncpa [#allocation11], 1 }

</bundles_post_ra>
